<compile_context>
chip_gen: v7x
topology: tpu7x:2x2x1
jax: 0.10.0
libtpu: 0.0.40
codegen_flags: <defaults>
</compile_context>

<pallas_src>
import jax
import jax.numpy as jnp
import numpy as np
from jax.experimental import pallas as pl
from jax.experimental.pallas import tpu as pltpu


def ca_sa_kernel(rgb_ref, depth_ref, w1_ref, w2_ref, cmat_ref, out_ref):
    rgb = rgb_ref[...]      # (TB, C, HW)  lane-dense
    depth = depth_ref[...]  # (TB, C, HW)

    # ---- CA_Enhance -----------------------------------------------------
    # AdaptiveMaxPool2d(1) over cat([rgb, depth], dim=1): lane-reduce max
    # over the fused H*W axis per (batch, channel).
    rgb_max = jnp.max(rgb, axis=2)                        # (TB, C)
    dep_max = jnp.max(depth, axis=2)                      # (TB, C)
    x_max = jnp.concatenate([rgb_max, dep_max], axis=1)   # (TB, 2C)

    # fc1 (1x1 conv, no bias) + ReLU; fc2 (1x1 conv, no bias) + sigmoid.
    # Tiny contractions -> VPU broadcast-multiply + lane reduce (no MXU).
    w1 = w1_ref[...]                                      # (2C, 2C)
    w2 = w2_ref[...]                                      # (C, 2C)
    y1 = jnp.sum(x_max[:, None, :] * w1[None, :, :], axis=-1)   # (TB, 2C)
    y1 = jnp.maximum(y1, 0.0)
    y2 = jnp.sum(y1[:, None, :] * w2[None, :, :], axis=-1)      # (TB, C)
    ca = jax.nn.sigmoid(y2)                                      # (TB, C)

    # ---- SA_Enhance -----------------------------------------------------
    # Channel max of (depth * ca); the multiply is fused into the max so no
    # full attended temporary is kept live.
    m = jnp.max(depth * ca[:, :, None], axis=1)           # (TB, HW)

    # 7x7 conv, padding=3, as a single lane-dense matmul against the
    # precomputed (HW, HW) conv matrix.  HIGHEST precision keeps the f32
    # result numerically equivalent to the XLA conv reference.
    s = jnp.dot(m, cmat_ref[...],
                preferred_element_type=jnp.float32,
                precision=jax.lax.Precision.HIGHEST)       # (TB, HW)
    sa = jax.nn.sigmoid(s)

    # ---- final: depth * spatial attention --------------------------------
    out_ref[...] = (depth * sa[:, None, :]).astype(out_ref.dtype)


def build_conv_matrix(convw, H, W):
    """(H*W, H*W) matrix M with (m.flat @ M) == conv2d(m, convw, padding=k//2)."""
    convw = np.asarray(convw, np.float32)
    k = convw.shape[0]
    pad = k // 2
    a = np.arange(H)[:, None, None, None]   # input row
    b = np.arange(W)[None, :, None, None]   # input col
    i = np.arange(H)[None, None, :, None]   # output row
    j = np.arange(W)[None, None, None, :]   # output col
    di = a - i + pad
    dj = b - j + pad
    valid = (di >= 0) & (di < k) & (dj >= 0) & (dj < k)
    taps = convw[np.clip(di, 0, k - 1), np.clip(dj, 0, k - 1)]
    cmat = np.where(valid, taps, 0.0).reshape(H * W, H * W).astype(np.float32)
    return jnp.asarray(cmat)


def ca_sa_enhance(rgb, depth, w1, w2, convw, *, target_block_bytes=512 * 1024):
    B, C, H, W = rgb.shape
    HW = H * W

    cmat = build_conv_matrix(convw, H, W)

    # Lane-dense views: fuse H*W into the last (lane) axis (contiguous
    # reshape, done once in HBM).
    rgb_f = rgb.reshape(B, C, HW)
    depth_f = depth.reshape(B, C, HW)

    # Block several batch elements per grid step so each step moves a
    # reasonably sized block (otherwise ~0.35us/step overhead dominates).
    per_batch_bytes = C * HW * np.dtype(depth.dtype).itemsize
    TB = int(max(1, min(B, target_block_bytes // max(per_batch_bytes, 1))))
    while B % TB:
        TB -= 1

    out = pl.pallas_call(
        ca_sa_kernel,
        out_shape=jax.ShapeDtypeStruct((B, C, HW), depth.dtype),
        grid=(B // TB,),
        in_specs=[
            pl.BlockSpec((TB, C, HW), lambda b: (b, 0, 0)),   # rgb (lane-dense)
            pl.BlockSpec((TB, C, HW), lambda b: (b, 0, 0)),   # depth (lane-dense)
            pl.BlockSpec((2 * C, 2 * C), lambda b: (0, 0)),   # fc1 weight
            pl.BlockSpec((C, 2 * C), lambda b: (0, 0)),       # fc2 weight
            pl.BlockSpec((HW, HW), lambda b: (0, 0)),         # 7x7 conv as matrix
        ],
        out_specs=pl.BlockSpec((TB, C, HW), lambda b: (b, 0, 0)),
        compiler_params=pltpu.CompilerParams(
            dimension_semantics=("parallel",)),               # v7x: shard over 2 TCs
    )(rgb_f, depth_f, w1, w2, cmat)
    return out.reshape(B, C, H, W)


def ref_forward(rgb, depth, w1, w2, convw):
    """Pure-JAX reference matching the PyTorch module semantics."""
    x = jnp.concatenate([rgb, depth], axis=1)                 # (B, 2C, H, W)
    xmax = jnp.max(x, axis=(2, 3))                            # (B, 2C)
    y1 = jnp.maximum(xmax @ w1.T, 0.0)                        # fc1 + relu
    y2 = jax.nn.sigmoid(y1 @ w2.T)                            # fc2 + sigmoid
    x_d = depth * y2[:, :, None, None]
    m = jnp.max(x_d, axis=1, keepdims=True)                   # (B, 1, H, W)
    sa = jax.lax.conv_general_dilated(
        m, convw[None, None], window_strides=(1, 1),
        padding=((3, 3), (3, 3)))
    sa = jax.nn.sigmoid(sa)
    return depth * sa


if __name__ == "__main__":
    B, C, H, W = 2, 4, 16, 16          # rgb / depth each have C channels
    in_planes = 2 * C                  # CA_SA_Enhance(in_planes)

    key = jax.random.PRNGKey(0)
    k_rgb, k_dep, k_w1, k_w2, k_cw = jax.random.split(key, 5)

    rgb = jax.random.normal(k_rgb, (B, C, H, W), jnp.float32)
    depth = jax.random.normal(k_dep, (B, C, H, W), jnp.float32)

    # Parameter shapes from the module __init__:
    # fc1: Conv2d(in_planes, in_planes, 1, bias=False)      -> (2C, 2C)
    # fc2: Conv2d(in_planes, in_planes // 2, 1, bias=False) -> (C, 2C)
    # SA conv1: Conv2d(1, 1, 7, padding=3, bias=False)      -> (7, 7)
    w1 = 0.1 * jax.random.normal(k_w1, (in_planes, in_planes), jnp.float32)
    w2 = 0.1 * jax.random.normal(k_w2, (in_planes // 2, in_planes), jnp.float32)
    convw = 0.1 * jax.random.normal(k_cw, (7, 7), jnp.float32)

    out = ca_sa_enhance(rgb, depth, w1, w2, convw)
    out = jax.block_until_ready(out)

    ref = jax.block_until_ready(ref_forward(rgb, depth, w1, w2, convw))
    assert out.shape == (B, C, H, W)
    assert np.allclose(np.asarray(out), np.asarray(ref), atol=1e-4, rtol=1e-4)

    print("KERNEL_OK")
</pallas_src>

<mosaic_0001>
module attributes {stable_mosaic.version = 11 : i64} {
  func.func @ca_sa_kernel(%arg0: i32, %arg1: memref<2x4x256xf32, #tpu.memory_space<vmem>>, %arg2: memref<2x4x256xf32, #tpu.memory_space<vmem>>, %arg3: memref<8x8xf32, #tpu.memory_space<vmem>>, %arg4: memref<4x8xf32, #tpu.memory_space<vmem>>, %arg5: memref<256x256xf32, #tpu.memory_space<vmem>>, %arg6: memref<2x4x256xf32, #tpu.memory_space<vmem>>) attributes {dimension_semantics = [#tpu.dimension_semantics<parallel>], iteration_bounds = array<i64: 1>, scalar_prefetch = 0 : i64, scratch_operands = 0 : i64, tpu.core_type = #tpu.core_type<tc>, window_params = [{transform_indices = @transform_0, window_bounds = array<i64: 2, 4, 256>}, {transform_indices = @transform_1, window_bounds = array<i64: 2, 4, 256>}, {pipeline_mode = #tpu.pipeline_mode<synchronous>, transform_indices = @transform_2, window_bounds = array<i64: 8, 8>}, {pipeline_mode = #tpu.pipeline_mode<synchronous>, transform_indices = @transform_3, window_bounds = array<i64: 4, 8>}, {pipeline_mode = #tpu.pipeline_mode<synchronous>, transform_indices = @transform_4, window_bounds = array<i64: 256, 256>}, {transform_indices = @transform_5, window_bounds = array<i64: 2, 4, 256>}]} {
    %c0 = arith.constant 0 : index
    %c0_0 = arith.constant 0 : index
    %c0_1 = arith.constant 0 : index
    %0 = vector.load %arg1[%c0, %c0_0, %c0_1] : memref<2x4x256xf32, #tpu.memory_space<vmem>>, vector<2x4x256xf32>
    %c0_2 = arith.constant 0 : index
    %c0_3 = arith.constant 0 : index
    %c0_4 = arith.constant 0 : index
    %1 = vector.load %arg2[%c0_2, %c0_3, %c0_4] : memref<2x4x256xf32, #tpu.memory_space<vmem>>, vector<2x4x256xf32>
    %cst = arith.constant dense<0xFF800000> : vector<2x4xf32>
    %2 = vector.multi_reduction <maximumf>, %0, %cst [2] : vector<2x4x256xf32> to vector<2x4xf32>
    %cst_5 = arith.constant dense<0xFF800000> : vector<2x4xf32>
    %3 = vector.multi_reduction <maximumf>, %1, %cst_5 [2] : vector<2x4x256xf32> to vector<2x4xf32>
    %4 = tpu.concatenate %2, %3 in 1 : vector<2x4xf32>, vector<2x4xf32> -> vector<2x8xf32>
    %c0_6 = arith.constant 0 : index
    %c0_7 = arith.constant 0 : index
    %5 = vector.load %arg3[%c0_6, %c0_7] : memref<8x8xf32, #tpu.memory_space<vmem>>, vector<8x8xf32>
    %c0_8 = arith.constant 0 : index
    %c0_9 = arith.constant 0 : index
    %6 = vector.load %arg4[%c0_8, %c0_9] : memref<4x8xf32, #tpu.memory_space<vmem>>, vector<4x8xf32>
    %7 = vector.shape_cast %4 : vector<2x8xf32> to vector<2x1x8xf32>
    %8 = vector.shape_cast %5 : vector<8x8xf32> to vector<1x8x8xf32>
    %9 = vector.broadcast %7 : vector<2x1x8xf32> to vector<2x8x8xf32>
    %10 = vector.broadcast %8 : vector<1x8x8xf32> to vector<2x8x8xf32>
    %11 = arith.mulf %9, %10 : vector<2x8x8xf32>
    %cst_10 = arith.constant dense<0.000000e+00> : vector<2x8xf32>
    %12 = vector.multi_reduction <add>, %11, %cst_10 [2] : vector<2x8x8xf32> to vector<2x8xf32>
    %cst_11 = arith.constant 0.000000e+00 : f32
    %13 = vector.broadcast %cst_11 : f32 to vector<2x8xf32>
    %14 = arith.maximumf %12, %13 : vector<2x8xf32>
    %15 = vector.shape_cast %14 : vector<2x8xf32> to vector<2x1x8xf32>
    %16 = vector.shape_cast %6 : vector<4x8xf32> to vector<1x4x8xf32>
    %17 = vector.broadcast %15 : vector<2x1x8xf32> to vector<2x4x8xf32>
    %18 = vector.broadcast %16 : vector<1x4x8xf32> to vector<2x4x8xf32>
    %19 = arith.mulf %17, %18 : vector<2x4x8xf32>
    %cst_12 = arith.constant dense<0.000000e+00> : vector<2x4xf32>
    %20 = vector.multi_reduction <add>, %19, %cst_12 [2] : vector<2x4x8xf32> to vector<2x4xf32>
    %21 = arith.negf %20 : vector<2x4xf32>
    %22 = math.exp %21 : vector<2x4xf32>
    %cst_13 = arith.constant 1.000000e+00 : f32
    %23 = vector.broadcast %cst_13 : f32 to vector<2x4xf32>
    %24 = arith.addf %23, %22 : vector<2x4xf32>
    %25 = arith.divf %23, %24 : vector<2x4xf32>
    %26 = vector.shape_cast %25 : vector<2x4xf32> to vector<2x4x1xf32>
    %27 = vector.broadcast %26 : vector<2x4x1xf32> to vector<2x4x256xf32>
    %28 = arith.mulf %1, %27 : vector<2x4x256xf32>
    %cst_14 = arith.constant dense<0xFF800000> : vector<2x256xf32>
    %29 = vector.multi_reduction <maximumf>, %28, %cst_14 [1] : vector<2x4x256xf32> to vector<2x256xf32>
    %c0_15 = arith.constant 0 : index
    %c0_16 = arith.constant 0 : index
    %30 = vector.load %arg5[%c0_15, %c0_16] : memref<256x256xf32, #tpu.memory_space<vmem>>, vector<256x256xf32>
    %cst_17 = arith.constant dense<0.000000e+00> : vector<2x256xf32>
    %31 = tpu.matmul %29, %30, %cst_17 {dimension_numbers = #tpu.dot_dimension_numbers<[1], [0], [0], [1], [0, 0, 1, 1], [], []>, precision = #tpu.contract_precision<fp32>} : vector<2x256xf32>, vector<256x256xf32>, vector<2x256xf32> -> vector<2x256xf32>
    %32 = arith.negf %31 : vector<2x256xf32>
    %33 = math.exp %32 : vector<2x256xf32>
    %cst_18 = arith.constant 1.000000e+00 : f32
    %34 = vector.broadcast %cst_18 : f32 to vector<2x256xf32>
    %35 = arith.addf %34, %33 : vector<2x256xf32>
    %36 = arith.divf %34, %35 : vector<2x256xf32>
    %37 = vector.shape_cast %36 : vector<2x256xf32> to vector<2x1x256xf32>
    %38 = vector.broadcast %37 : vector<2x1x256xf32> to vector<2x4x256xf32>
    %39 = arith.mulf %1, %38 : vector<2x4x256xf32>
    %c0_19 = arith.constant 0 : index
    %c0_20 = arith.constant 0 : index
    %c0_21 = arith.constant 0 : index
    %40 = vector.load %arg6[%c0_19, %c0_20, %c0_21] : memref<2x4x256xf32, #tpu.memory_space<vmem>>, vector<2x4x256xf32>
    tpu.vector_store %arg6[%c0_19, %c0_20, %c0_21], %39 {strides = array<i32>} : memref<2x4x256xf32, #tpu.memory_space<vmem>>, vector<2x4x256xf32>,
    return
  }
  func.func @transform_0(%arg0: i32) -> (i32, i32, i32) {
    %c0_i32 = arith.constant 0 : i32
    %c0_i32_0 = arith.constant 0 : i32
    %c0_i32_1 = arith.constant 0 : i32
    return %arg0, %c0_i32, %c0_i32_0 : i32, i32, i32
  }
  func.func @transform_1(%arg0: i32) -> (i32, i32, i32) {
    %c0_i32 = arith.constant 0 : i32
    %c0_i32_0 = arith.constant 0 : i32
    %c0_i32_1 = arith.constant 0 : i32
    return %arg0, %c0_i32, %c0_i32_0 : i32, i32, i32
  }
  func.func @transform_2(%arg0: i32) -> (i32, i32) {
    %c0_i32 = arith.constant 0 : i32
    %c0_i32_0 = arith.constant 0 : i32
    %c0_i32_1 = arith.constant 0 : i32
    return %c0_i32, %c0_i32_0 : i32, i32
  }
  func.func @transform_3(%arg0: i32) -> (i32, i32) {
    %c0_i32 = arith.constant 0 : i32
    %c0_i32_0 = arith.constant 0 : i32
    %c0_i32_1 = arith.constant 0 : i32
    return %c0_i32, %c0_i32_0 : i32, i32
  }
  func.func @transform_4(%arg0: i32) -> (i32, i32) {
    %c0_i32 = arith.constant 0 : i32
    %c0_i32_0 = arith.constant 0 : i32
    %c0_i32_1 = arith.constant 0 : i32
    return %c0_i32, %c0_i32_0 : i32, i32
  }
  func.func @transform_5(%arg0: i32) -> (i32, i32, i32) {
    %c0_i32 = arith.constant 0 : i32
    %c0_i32_0 = arith.constant 0 : i32
    %c0_i32_1 = arith.constant 0 : i32
    return %arg0, %c0_i32, %c0_i32_0 : i32, i32, i32
  }
}

</mosaic_0001>

<bundles_post_ra>
// kernel: tpu_custom_call.1
= control target key start
LH: loop header
LB: loop body
LE: loop exit
PB: predicated region body
PF: predicated region fallthrough
CT: control target
= control target key end

     0   :  { %10 = vsyncpa [#allocation3], 0  ;;  %s3281_s0 = inlined_call_operand.hbm [shape: f32[2,4,256], index: 0, kind: input, shape index: {}]   ;;  %s3282_s1 = inlined_call_operand.hbm [shape: f32[2,4,256], index: 1, kind: input, shape index: {}]   ;;  %s3283_s2 = inlined_call_operand.hbm [shape: f32[8,8], index: 2, kind: input, shape index: {}]   ;;  %s3284_s3 = inlined_call_operand.vmem [shape: f32[4,8], index: 3, kind: input, shape index: {}]   ;;  %s3285_s4 = inlined_call_operand.hbm [shape: f32[256,256], index: 4, kind: input, shape index: {}]   ;;  %s3286_s5 = inlined_call_operand.hbm [shape: f32[2,4,256], index: 5, kind: output, shape index: {}]  }
   0x1   :  { %11 = vsyncpa [#allocation6], 0 }
   0x2   :  { %12 = vsyncpa [#allocation9], 0 }
   0x3   :  { %13 = vsyncpa [#allocation4], 0  ;;  %s2363_s18 = smov [#allocation5]   ;;  %s2364_s20 = smov [#allocation2]  }
   0x4   :  { %s31_s19 = sshll.u32 %s2363_s18, 4  ;;  %s19_s21 = sshll.u32 %s2364_s20, 4  ;;  %s32_s19 = int_to_ptr.vmem [resolvable:$true] %s31_s19  ;;  %s2405_s21 = int_to_ptr.vmem [resolvable:$true] %s19_s21 }
   0x5   :  { %s2245_s24 = scalar_lea.hbm %s3282_s1, 256 }
   0x6   :  { %p2246_p0 = scmp.ne.s32.totalorder %s3282_s1, %s2245_s24  ;;  %p2249_p1 = scmp.lt.u32.totalorder %s2245_s24, %s3282_s1 }
   0x8   :  { %p2251_p2 = pnand %p2249_p1, %p2246_p0 }
   0xa   :  { %2254 = shalt.err (!%p2251_p2)
}
   0xb   :  { %s2255_s29 = scalar_lea.vmem %s32_s19, 256  ;;  %p2260_p4 = scmp.lt.s32.totalorder %s32_s19, %s32_s19 }
   0xc   :  { %p2256_p3 = scmp.ne.s32.totalorder %s32_s19, %s2255_s29  ;;  %p2261_p5 = scmp.lt.s32.totalorder %s2255_s29, %s2255_s29 }
   0xe   :  { %p2262_p6 = por %p2261_p5, %p2260_p4 }
  0x10   :  { %p2263_p7 = pnand %p2262_p6, %p2256_p3 }
  0x12   :  { %2266 = shalt.err (!%p2263_p7)
}
  0x13   :  { %s2365_s30 = smov 128   ;;  %s2366_s6 = smov 8  }
  0x14   :  { %37 = dma.hbm_to_vmem [thread:$0]  %s3282_s1, 256, %s32_s19, [#allocation6], %s2365_s30, %s2365_s30, %s2366_s6  }
  0x15   :  { %s2267_s11 = scalar_lea.hbm %s3281_s0, 256 }
  0x16   :  { %p2268_p8 = scmp.ne.s32.totalorder %s3281_s0, %s2267_s11  ;;  %p2271_p9 = scmp.lt.u32.totalorder %s2267_s11, %s3281_s0 }
  0x18   :  { %p2273_p10 = pnand %p2271_p9, %p2268_p8 }
  0x1a   :  { %2276 = shalt.err (!%p2273_p10)
}
  0x1b   :  { %s2277_s16 = scalar_lea.vmem %s2405_s21, 256  ;;  %p2282_p12 = scmp.lt.s32.totalorder %s2405_s21, %s2405_s21 }
  0x1c   :  { %p2278_p11 = scmp.ne.s32.totalorder %s2405_s21, %s2277_s16  ;;  %p2283_p13 = scmp.lt.s32.totalorder %s2277_s16, %s2277_s16 }
  0x1e   :  { %p2284_p0 = por %p2283_p13, %p2282_p12 }
  0x20   :  { %p2285_p1 = pnand %p2284_p0, %p2278_p11 }
  0x22   :  { %2288 = shalt.err (!%p2285_p1)
}
  0x23   :  { %25 = dma.hbm_to_vmem [thread:$0]  %s3281_s0, 256, %s2405_s21, [#allocation3], %s2365_s30, %s2365_s30, %s2366_s6  }
  0x24   :  { %s2367_s18 = smov [#allocation7]   ;;  %s2368_s20 = smov [#allocation8]  }
  0x25   :  { %s44_s19 = sshll.u32 %s2367_s18, 4  ;;  %s55_s22 = sshll.u32 %s2368_s20, 4  ;;  %s45_s19 = int_to_ptr.vmem [resolvable:$true] %s44_s19  ;;  %s2442_s22 = int_to_ptr.vmem [resolvable:$true] %s55_s22 }
  0x26   :  { %s2289_s25 = scalar_lea.hbm %s3283_s2, 128 }
  0x27   :  { %p2290_p2 = scmp.ne.s32.totalorder %s3283_s2, %s2289_s25  ;;  %p2293_p3 = scmp.lt.u32.totalorder %s2289_s25, %s3283_s2 }
  0x29   :  { %p2295_p4 = pnand %p2293_p3, %p2290_p2 }
  0x2b   :  { %2298 = shalt.err (!%p2295_p4)
}
  0x2c   :  { %s2299_s0 = scalar_lea.vmem %s45_s19, 128  ;;  %p2304_p6 = scmp.lt.s32.totalorder %s45_s19, %s45_s19 }
  0x2d   :  { %p2300_p5 = scmp.ne.s32.totalorder %s45_s19, %s2299_s0  ;;  %p2305_p7 = scmp.lt.s32.totalorder %s2299_s0, %s2299_s0 }
  0x2f   :  { %p2306_p8 = por %p2305_p7, %p2304_p6 }
  0x31   :  { %p2307_p9 = pnand %p2306_p8, %p2300_p5 }
  0x33   :  { %2310 = shalt.err (!%p2307_p9)
}
  0x34   :  { %47 = dma.hbm_to_vmem [thread:$0]  %s3283_s2, 128, %s45_s19, [#allocation6]  }
  0x35   :  { %s2311_s10 = scalar_lea.hbm %s3285_s4, 8192 }
  0x36   :  { %p2312_p10 = scmp.ne.s32.totalorder %s3285_s4, %s2311_s10  ;;  %p2315_p11 = scmp.lt.u32.totalorder %s2311_s10, %s3285_s4 }
  0x38   :  { %p2317_p12 = pnand %p2315_p11, %p2312_p10 }
  0x3a   :  { %2320 = shalt.err (!%p2317_p12)
}
  0x3b   :  { %s2321_s15 = scalar_lea.vmem %s2442_s22, 8192  ;;  %p2326_p0 = scmp.lt.s32.totalorder %s2442_s22, %s2442_s22 }
  0x3c   :  { %p2322_p13 = scmp.ne.s32.totalorder %s2442_s22, %s2321_s15  ;;  %p2327_p1 = scmp.lt.s32.totalorder %s2321_s15, %s2321_s15 }
  0x3e   :  { %p2328_p2 = por %p2327_p1, %p2326_p0 }
  0x40   :  { %p2329_p3 = pnand %p2328_p2, %p2322_p13 }
  0x42   :  { %2332 = shalt.err (!%p2329_p3)
}
  0x43   :  { %s2369_s2 = smov 256   ;;  %s2370_s16 = smov 16  }
  0x44   :  { %61 = dma.hbm_to_vmem [thread:$0]  %s3285_s4, 8192, %s2442_s22, [#allocation9], %s2369_s2, %s2369_s2, %s2370_s16  }
  0x45   :  { %2355 = dma.done.wait [#allocation3], 256  }
  0x46   :  { %2356 = vsyncadd [#allocation3], 4294967040 }
  0x47   :  { %2357 = dma.done.wait [#allocation6], 384  }
  0x48   :  { %2358 = vsyncadd [#allocation6], 4294966912 }
  0x49   :  { %2359 = dma.done.wait [#allocation9], 8192  }
  0x4a   :  { %2360 = vsyncadd [#allocation9], 4294959104  ;;  %vm84_vm0 = vcmask 1043456   ;;  %v2473_v0 = vld [vmem:[#allocation5] sm:$0xff]  ;;  %v74_v1 = vld [vmem:[#allocation2] sm:$0xff]  ;;  %v113_v20 = vlaneseq  ;;  %vm123_vm1 = vcmask 1041409  }
  0x4b   :  { %v2475_v2 = vld [vmem:[#allocation5 + $0x8] sm:$0xff]  ;;  %v97_v3 = vcombine.high %v2473_v0, %v2473_v0  ;;  %v101_v4 = vsel %vm84_vm0, %v2473_v0, -inf  ;;  %v80_v5 = vcombine.high %v74_v1, %v74_v1  ;;  %v85_v6 = vsel %vm84_vm0, %v74_v1, -inf  ;;  %v75_v7 = vld [vmem:[#allocation2 + $0x8] sm:$0xff]  ;;  %v142_v23 = vld [vmem:[%s3284_s3] sm:$0xf] }
  0x4c   :  { %v98_v8 = vcombine.high %v2475_v2, %v2475_v2  ;;  %v81_v9 = vcombine.high %v75_v7, %v75_v7  ;;  %v106_v12 = vsel %vm84_vm0, %v2475_v2, -inf  ;;  %v90_v13 = vsel %vm84_vm0, %v75_v7, -inf  ;;  %v141_v50 = vld [vmem:[#allocation7] sm:$0xff]  ;;  %s2374_s3 = smov [#allocation10]  }
  0x4d   :  { %v102_v10 = vsel %vm84_vm0, %v97_v3, -inf  ;;  %v86_v11 = vsel %vm84_vm0, %v80_v5, -inf  ;;  %v2491_v21 = vshrl.u32 %v113_v20, 7  ;;  %v114_v27 = vand.u32 127, %v113_v20  ;;  %s1797_s19 = sshll.u32 %s2374_s3, 4  ;;  %s1798_s19 = int_to_ptr.vmem [resolvable:$true] %s1797_s19 }
  0x4e   :  { %v103_v14 = vmax.f32 %v101_v4, %v102_v10  ;;  %v87_v15 = vmax.f32 %v85_v6, %v86_v11  ;;  %v107_v16 = vsel %vm84_vm0, %v98_v8, -inf  ;;  %v91_v17 = vsel %vm84_vm0, %v81_v9, -inf  ;;  %s2333_s20 = scalar_lea.vmem %s1798_s19, 256  ;;  %p2338_p5 = scmp.lt.s32.totalorder %s1798_s19, %s1798_s19 }
  0x4f   :  { %v108_v18 = vmax.f32 %v106_v12, %v107_v16  ;;  %v92_v19 = vmax.f32 %v90_v13, %v91_v17  ;;  %v2494_v22 = vsub.s32 1, %v2491_v21  ;;  %v204_v25 = vsub.s32 2, %v2491_v21  ;;  %v376_v16 = vld [vmem:[#allocation8 + $0x8] sm:$0xff]  ;;  %v378_v17 = vld [vmem:[#allocation8 + $0x18] sm:$0xff]  ;;  %p2334_p4 = scmp.ne.s32.totalorder %s1798_s19, %s2333_s20  ;;  %p2339_p6 = scmp.lt.s32.totalorder %s2333_s20, %s2333_s20 }
  0x50   :  { %104 = vmax.xlane.f32.xlu1 %v103_v14  ;;  %88 = vmax.xlane.f32.xlu0 %v87_v15  ;;  %v2371_v28 = vmov 1966171168   ;;  %v128_v30 = vadd.s32 4294967292, %v114_v27  ;;  %v2502_v34 = vsub.s32 %v114_v27, %v2491_v21  ;;  %vm139_vm2 = vcmask 31744  }
  0x51   :  { %3419 = vst [vmem:[#allocation15_spill] sm:$0xff] %v2494_v22  ;;  %v198_v24 = vrot.slane %v142_v23, %v2494_v22  ;;  %v205_v26 = vrot.slane %v142_v23, %v204_v25  ;;  %v145_v29 = vunpack.c.l.s4 %v2371_v28  ;;  %v2514_v47 = vsub.s32 0, %v2491_v21  ;;  %v380_v25 = vld [vmem:[#allocation8 + $0x28] sm:$0xff]  ;;  %p2340_p7 = por %p2339_p6, %p2338_p5 }
  0x52   :  { %v131_v35 = vsub.s32 %v128_v30, %v2491_v21  ;;  %vm178_vm3 = vcmask 64512   ;;  %v211_v58 = vsub.s32 3, %v2491_v21  ;;  %v2372_v60 = vmov 0   ;;  %v379_v30 = vld [vmem:[#allocation8 + $0x20] sm:$0xff]  ;;  %v2744_v22 = vld [vmem:[#allocation8 + $0x128] sm:$0xff] }
  0x53   :  { %v146_v33 = vunpack.c.0.s8 %v145_v29  ;;  %3421 = vst [vmem:[#allocation17_spill] sm:$0xff] %v2514_v47  ;;  %2222 = vset.pattern.permute.xlu1 %v2372_v60  ;;  %2221 = vset.pattern.permute.xlu0 %v2372_v60  ;;  %v191_v61 = vrot.slane %v142_v23, %v2514_v47  ;;  %v451_v20 = vand.u32 4294901760, %v378_v17  ;;  %v455_v28 = vand.u32 4294901760, %v380_v25  ;;  %p2341_p8 = pnand %p2340_p7, %p2334_p4 }
  0x54   :  { %109 = vmax.xlane.f32.xlu1 %v108_v18  ;;  %93 = vmax.xlane.f32.xlu0 %v92_v19  ;;  %v212_v59 = vrot.slane %v142_v23, %v211_v58  ;;  %v375_v18 = vld [vmem:[#allocation8] sm:$0xff]  ;;  %v447_v19 = vand.u32 4294901760, %v376_v16  ;;  %v377_v23 = vld [vmem:[#allocation8 + $0x10] sm:$0xff]  ;;  %vm293_vm4 = vcmask 1042434   ;;  %vm295_vm5 = vcmask 1043459  }
  0x55   :  { %v2506_v37 = vsub.s32 %v146_v33, %v2491_v21  ;;  %v453_v27 = vand.u32 4294901760, %v377_v23  ;;  %vm302_vm6 = vcmask 60416  }
  0x56   :  { %v2522_v33 = vpack.c.bf16 %v451_v20, %v447_v19 }
  0x57   :  { %3420 = vst [vmem:[#allocation16_spill] sm:$0xff] %v2506_v37 }
  0x58   :  { %3422 = vst [vmem:[#allocation18_spill] sm:$0xff] %v2522_v33  ;;  %2008 = vmatprep.subr.bf16.mxu0 %v2522_v33  ;;  %1816 = vmatprep.subr.bf16.mxu1 %v2522_v33 }
  0x65   :  { %200 = vbcast.lane.b32.xlu1 %v198_v24, 256  ;;  %v449_v24 = vand.u32 4294901760, %v375_v18 }
  0x69   :  { %207 = vbcast.lane.b32.xlu1 %v205_v26, 256  ;;  %v382_v26 = vld [vmem:[#allocation8 + $0x38] sm:$0xff] }
  0x6a   :  { %v459_v29 = vand.u32 4294901760, %v382_v26 }
  0xdd   :  { %v105_v31 = vpop.xlane.xlu1 %104  ;;  %v89_v32 = vpop.xlane.xlu0 %88 }
  0xde   :  { %v132_v39 = vrot.slane %v105_v31, %v131_v35  ;;  %v118_v40 = vrot.slane %v89_v32, %v2502_v34  ;;  %v381_v31 = vld [vmem:[#allocation8 + $0x30] sm:$0xff]  ;;  %v384_v32 = vld [vmem:[#allocation8 + $0x48] sm:$0xff] }
  0xe1   :  { %v110_v36 = vpop.xlane.xlu1 %109  ;;  %v94_v38 = vpop.xlane.xlu0 %93 }
  0xe2   :  { %v136_v41 = vrot.slane %v110_v36, %v131_v35  ;;  %v122_v42 = vrot.slane %v94_v38, %v2502_v34  ;;  %v2524_v35 = vsub.f32 %v376_v16, %v447_v19  ;;  %v2526_v36 = vsub.f32 %v378_v17, %v451_v20 }
  0xe3   :  { %v2528_v38 = vsub.f32 %v375_v18, %v449_v24 }
  0xe4   :  { %v137_v43 = vsel %vm123_vm1, %v136_v41, %v132_v39  ;;  %v124_v44 = vsel %vm123_vm1, %v122_v42, %v118_v40  ;;  %3423 = vst [vmem:[#allocation19_spill] sm:$0xff] %v2524_v35  ;;  %3424 = vst [vmem:[#allocation20_spill] sm:$0xff] %v2526_v36  ;;  %v386_v39 = vld [vmem:[#allocation8 + $0x58] sm:$0xff]  ;;  %v383_v40 = vld [vmem:[#allocation8 + $0x40] sm:$0xff]  ;;  %v2530_v42 = vpack.c.bf16 %v453_v27, %v449_v24 }
  0xe5   :  { %v140_v45 = vsel %vm139_vm2, %v124_v44, %v137_v43  ;;  %v201_v62 = vpop.permute.xlu1 %200  ;;  %3425 = vst [vmem:[#allocation21_spill] sm:$0xff] %v2528_v38  ;;  %v385_v41 = vld [vmem:[#allocation8 + $0x50] sm:$0xff]  ;;  %v2532_v43 = vsub.f32 %v377_v23, %v453_v27  ;;  %v2534_v44 = vpack.c.bf16 %v459_v29, %v455_v28  ;;  %v2580_v27 = vld [vmem:[#allocation8 + $0x68] sm:$0xff] }
  0xe6   :  { %v150_v46 = vrot.slane %v140_v45, %v2506_v37  ;;  %3426 = vst [vmem:[#allocation22_spill] sm:$0xff] %v2530_v42  ;;  %v2536_v45 = vsub.f32 %v380_v25, %v455_v28  ;;  %2010 = vmatpush1.bf16.msra.mxu0 %v2530_v42  ;;  %1818 = vmatpush1.bf16.msra.mxu1 %v2530_v42  ;;  %v2582_v28 = vld [vmem:[#allocation8 + $0x78] sm:$0xff] }
  0xe7   :  { %3427 = vst [vmem:[#allocation23_spill] sm:$0xff] %v2532_v43  ;;  %3428 = vst [vmem:[#allocation24_spill] sm:$0xff] %v2534_v44  ;;  %2012 = vmatprep.subr.bf16.mxu0 %v2534_v44  ;;  %1820 = vmatprep.subr.bf16.mxu1 %v2534_v44  ;;  %v421_v44 = vld [vmem:[#allocation8 + $0x170] sm:$0xff] }
  0xe8   :  { %v158_v48 = vrot.slane %v150_v46, %v2506_v37  ;;  %v151_v49 = vcombine.high %v150_v46, %v150_v46  ;;  %3429 = vst [vmem:[#allocation25_spill] sm:$0xff] %v2536_v45  ;;  %v2540_v46 = vsub.f32 %v382_v26, %v459_v29  ;;  %v3306_v29 = vand.u32 4294901760, %v2580_v27 }
  0xe9   :  { %v208_v63 = vpop.permute.xlu1 %207  ;;  %v541_v33 = vand.u32 4294901760, %v421_v44 }
  0xea   :  { %v169_v51 = vrot.slane %v158_v48, %v2514_v47  ;;  %v165_v52 = vrot.slane %v151_v49, %v2506_v37  ;;  %3430 = vst [vmem:[#allocation26_spill] sm:$0xff] %v2540_v46  ;;  %v457_v48 = vand.u32 4294901760, %v379_v30  ;;  %v461_v49 = vand.u32 4294901760, %v381_v31 }
  0xeb   :  { %v3329_v37 = vand.u32 4294901760, %v2744_v22 }
  0xec   :  { %v176_v53 = vmul.f32 %v169_v51, %v141_v50  ;;  %v173_v54 = vrot.slane %v165_v52, %v2514_v47  ;;  %v467_v51 = vand.u32 4294901760, %v386_v39  ;;  %v465_v52 = vand.u32 4294901760, %v383_v40  ;;  %v2746_v47 = vld [vmem:[#allocation8 + $0x138] sm:$0xff] }
  0xee   :  { %v179_v55 = vsel %vm178_vm3, %v176_v53, 0.0  ;;  %v177_v56 = vmul.f32 %v173_v54, %v141_v50  ;;  %v463_v50 = vand.u32 4294901760, %v384_v32  ;;  %v469_v53 = vand.u32 4294901760, %v385_v41 }
  0xef   :  { %180 = vadd.xlane.f32.xlu0 %v179_v55  ;;  %v2545_v54 = vpack.c.bf16 %v461_v49, %v457_v48  ;;  %v2547_v55 = vsub.f32 %v379_v30, %v457_v48  ;;  %v2558_v60 = vsub.f32 %v383_v40, %v465_v52  ;;  %v3305_v30 = vand.u32 4294901760, %v2582_v28  ;;  %v2604_v48 = vld [vmem:[#allocation8 + $0x88] sm:$0xff] }
  0xf0   :  { %v182_v57 = vsel %vm178_vm3, %v177_v56, 0.0  ;;  %v2549_v56 = vsub.f32 %v381_v31, %v461_v49  ;;  %v2554_v58 = vsub.f32 %v384_v32, %v463_v50  ;;  %v2586_v31 = vld [vmem:[#allocation8 + $0x60] sm:$0xff]  ;;  %v2588_v32 = vld [vmem:[#allocation8 + $0x70] sm:$0xff]  ;;  %v2606_v49 = vld [vmem:[#allocation8 + $0x98] sm:$0xff]  ;;  %v3465_v46 = vand.u32 4294901760, %v2604_v48 }
  0xf1   :  { %183 = vadd.xlane.f32.xlu1 %v182_v57  ;;  %3431 = vst [vmem:[#allocation27_spill] sm:$0xff] %v2545_v54  ;;  %3432 = vst [vmem:[#allocation28_spill] sm:$0xff] %v2547_v55  ;;  %v2552_v57 = vpack.c.bf16 %v467_v51, %v463_v50  ;;  %2014 = vmatpush1.bf16.msra.mxu0 %v2545_v54  ;;  %v2596_v40 = vpack.c.bf16 %v3305_v30, %v3306_v29  ;;  %v3298_v50 = vand.u32 4294901760, %v2604_v48 }
  0xf2   :  { %3433 = vst [vmem:[#allocation29_spill] sm:$0xff] %v2549_v56  ;;  %3435 = vst [vmem:[#allocation31_spill] sm:$0xff] %v2554_v58  ;;  %1822 = vmatpush1.bf16.msra.mxu1 %v2545_v54  ;;  %v419_v54 = vld [vmem:[#allocation8 + $0x160] sm:$0xff]  ;;  %v3461_v58 = vand.u32 4294901760, %v2586_v31 }
  0xf3   :  { %3434 = vst [vmem:[#allocation30_spill] sm:$0xff] %v2552_v57  ;;  %3437 = vst [vmem:[#allocation33_spill] sm:$0xff] %v2558_v60  ;;  %2016 = vmatprep.subr.bf16.mxu0 %v2552_v57  ;;  %1824 = vmatprep.subr.bf16.mxu1 %v2552_v57  ;;  %v537_v42 = vand.u32 4294901760, %v419_v54 }
  0xf4   :  { %3440 = vst [vmem:[#allocation36_spill] sm:$0xff] %v2596_v40  ;;  %v2795_v56 = vsub.f32 %v2586_v31, %v3461_v58 }
  0xf6   :  { %3462 = vst [vmem:[#allocation55_spill] sm:$0xff] %v2795_v56 }
 0x102   :  { %214 = vbcast.lane.b32.xlu1 %v212_v59, 256  ;;  %v2556_v59 = vsub.f32 %v386_v39, %v467_v51  ;;  %v3299_v39 = vand.u32 4294901760, %v2588_v32  ;;  %v3297_v51 = vand.u32 4294901760, %v2606_v49 }
 0x104   :  { %3436 = vst [vmem:[#allocation32_spill] sm:$0xff] %v2556_v59  ;;  %v3459_v59 = vand.u32 4294901760, %v2582_v28 }
 0x105   :  { %193 = vbcast.lane.b32.xlu0 %v191_v61, 256  ;;  %v2560_v61 = vsub.f32 %v385_v41, %v469_v53 }
 0x107   :  { %3438 = vst [vmem:[#allocation34_spill] sm:$0xff] %v2560_v61  ;;  %v3457_v61 = vand.u32 4294901760, %v2580_v27 }
 0x109   :  { %v2785_v60 = vsub.f32 %v2580_v27, %v3457_v61  ;;  %v2805_v61 = vsub.f32 %v2604_v48, %v3465_v46  ;;  %v3466_v27 = vand.u32 4294901760, %v2606_v49 }
 0x10b   :  { %3458 = vst [vmem:[#allocation53_spill] sm:$0xff] %v2785_v60 }
 0x17c   :  { %v181_v1 = vpop.xlane.xlu0 %180 }
 0x17d   :  { %v185_v3 = vmax.f32 %v181_v1, 0.0 }
 0x17e   :  { %v184_v4 = vpop.xlane.xlu1 %183 }
 0x17f   :  { %v221_v5 = vmul.f32 %v201_v62, %v185_v3  ;;  %v186_v7 = vmax.f32 %v184_v4, 0.0  ;;  %v222_v9 = vmul.f32 %v208_v63, %v185_v3 }
 0x180   :  { %v194_v6 = vpop.permute.xlu0 %193 }
 0x181   :  { %v220_v8 = vmul.f32 %v194_v6, %v185_v3  ;;  %240 = vperm.xlu1 %2222, %v221_v5   ;;  %v225_v10 = vmul.f32 %v201_v62, %v186_v7  ;;  %v224_v11 = vmul.f32 %v194_v6, %v186_v7  ;;  %v226_v13 = vmul.f32 %v208_v63, %v186_v7 }
 0x182   :  { %v215_v12 = vpop.permute.xlu1 %214  ;;  %v2564_v62 = vpack.c.bf16 %v469_v53, %v465_v52  ;;  %v2612_v52 = vld [vmem:[#allocation8 + $0x80] sm:$0xff]  ;;  %v2614_v53 = vld [vmem:[#allocation8 + $0x90] sm:$0xff] }
 0x183   :  { %237 = vperm.xlu0 %2221, %v220_v8   ;;  %v223_v14 = vmul.f32 %v215_v12, %v185_v3  ;;  %v227_v15 = vmul.f32 %v215_v12, %v186_v7 }
 0x184   :  { %3439 = vst [vmem:[#allocation35_spill] sm:$0xff] %v2564_v62  ;;  %2018 = vmatpush1.bf16.msra.mxu0 %v2564_v62  ;;  %1826 = vmatpush1.bf16.msra.mxu1 %v2564_v62  ;;  %v422_v62 = vld [vmem:[#allocation8 + $0x178] sm:$0xff] }
 0x185   :  { %243 = vperm.xlu1 %2222, %v222_v9   ;;  %2020 = vmatprep.subr.bf16.mxu0 %v2596_v40  ;;  %v539_v57 = vand.u32 4294901760, %v422_v62 }
 0x186   :  { %1828 = vmatprep.subr.bf16.mxu1 %v2596_v40  ;;  %v420_v40 = vld [vmem:[#allocation8 + $0x168] sm:$0xff] }
 0x187   :  { %252 = vperm.xlu0 %2221, %v225_v10  }
 0x189   :  { %249 = vperm.xlu1 %2222, %v224_v11  }
 0x18b   :  { %255 = vperm.xlu0 %2221, %v226_v13  }
 0x18d   :  { %246 = vperm.xlu1 %2222, %v223_v14  }
 0x18f   :  { %258 = vperm.xlu0 %2221, %v227_v15  }
 0x200   :  { %v241_v63 = vpop.permute.xlu1 %240 }
 0x201   :  { %v267_v7 = vrot.slane %v241_v63, %v2502_v34  ;;  %v3296_v63 = vand.u32 4294901760, %v2612_v52 }
 0x202   :  { %v238_v1 = vpop.permute.xlu0 %237 }
 0x203   :  { %v263_v5 = vrot.slane %v238_v1, %v2502_v34  ;;  %v3295_v1 = vand.u32 4294901760, %v2614_v53 }
 0x204   :  { %v244_v3 = vpop.permute.xlu1 %243 }
 0x205   :  { %v271_v9 = vrot.slane %v244_v3, %v2502_v34  ;;  %v292_v11 = vsel %vm123_vm1, %v267_v7, %v263_v5  ;;  %v2624_v3 = vpack.c.bf16 %v3297_v51, %v3298_v50  ;;  %v2632_v5 = vld [vmem:[#allocation8 + $0xa8] sm:$0xff]  ;;  %v2718_v50 = vld [vmem:[#allocation8 + $0x118] sm:$0xff] }
 0x206   :  { %v253_v4 = vpop.permute.xlu0 %252  ;;  %v3290_v7 = vand.u32 4294901760, %v2632_v5  ;;  %v2716_v51 = vld [vmem:[#allocation8 + $0x108] sm:$0xff]  ;;  %v3472_v46 = vand.u32 4294901760, %v2632_v5 }
 0x207   :  { %v283_v12 = vrot.slane %v253_v4, %v2502_v34  ;;  %v294_v18 = vsel %vm293_vm4, %v271_v9, %v292_v11  ;;  %3442 = vst [vmem:[#allocation38_spill] sm:$0xff] %v2624_v3  ;;  %v2630_v4 = vpack.c.bf16 %v3295_v1, %v3296_v63  ;;  %v2640_v9 = vld [vmem:[#allocation8 + $0xa0] sm:$0xff] }
 0x208   :  { %v250_v6 = vpop.permute.xlu1 %249  ;;  %v3288_v11 = vand.u32 4294901760, %v2640_v9 }
 0x209   :  { %v279_v8 = vrot.slane %v250_v6, %v2502_v34  ;;  %3443 = vst [vmem:[#allocation39_spill] sm:$0xff] %v2630_v4  ;;  %v2634_v6 = vld [vmem:[#allocation8 + $0xb8] sm:$0xff] }
 0x20a   :  { %v256_v10 = vpop.permute.xlu0 %255  ;;  %v3474_v48 = vand.u32 4294901760, %v2634_v6 }
 0x20b   :  { %v287_v13 = vrot.slane %v256_v10, %v2502_v34  ;;  %v297_v15 = vsel %vm123_vm1, %v283_v12, %v279_v8  ;;  %v3289_v8 = vand.u32 4294901760, %v2634_v6  ;;  %v2642_v10 = vld [vmem:[#allocation8 + $0xb0] sm:$0xff] }
 0x20c   :  { %v247_v14 = vpop.permute.xlu1 %246  ;;  %v3287_v12 = vand.u32 4294901760, %v2642_v10 }
 0x20d   :  { %v275_v16 = vrot.slane %v247_v14, %v2502_v34  ;;  %v298_v24 = vsel %vm293_vm4, %v287_v13, %v297_v15  ;;  %v2652_v13 = vpack.c.bf16 %v3289_v8, %v3290_v7  ;;  %v2660_v15 = vld [vmem:[#allocation8 + $0xc8] sm:$0xff] }
 0x20e   :  { %v259_v17 = vpop.permute.xlu0 %258  ;;  %v2658_v14 = vpack.c.bf16 %v3287_v12, %v3288_v11  ;;  %v2688_v12 = vld [vmem:[#allocation8 + $0xe8] sm:$0xff]  ;;  %v2690_v11 = vld [vmem:[#allocation8 + $0xf8] sm:$0xff] }
 0x20f   :  { %v291_v19 = vrot.slane %v259_v17, %v2502_v34  ;;  %v296_v20 = vsel %vm295_vm5, %v275_v16, %v294_v18  ;;  %v3300_v34 = vand.u32 4294901760, %v2586_v31  ;;  %3444 = vst [vmem:[#allocation40_spill] sm:$0xff] %v2652_v13  ;;  %v2662_v16 = vld [vmem:[#allocation8 + $0xd8] sm:$0xff]  ;;  %v3292_v17 = vand.u32 4294901760, %v2660_v15 }
 0x210   :  { %v303_v23 = vsel %vm302_vm6, %v296_v20, 0.0  ;;  %3445 = vst [vmem:[#allocation41_spill] sm:$0xff] %v2658_v14  ;;  %v3291_v18 = vand.u32 4294901760, %v2662_v16  ;;  %v2670_v20 = vld [vmem:[#allocation8 + $0xd0] sm:$0xff]  ;;  %v3302_v8 = vand.u32 4294901760, %v2688_v12  ;;  %v3301_v7 = vand.u32 4294901760, %v2690_v11 }
 0x211   :  { %304 = vadd.xlane.f32.xlu1 %v303_v23  ;;  %v299_v25 = vsel %vm295_vm5, %v291_v19, %v298_v24  ;;  %v2602_v41 = vpack.c.bf16 %v3299_v39, %v3300_v34  ;;  %v2668_v19 = vld [vmem:[#allocation8 + $0xc0] sm:$0xff]  ;;  %v3293_v24 = vand.u32 4294901760, %v2670_v20  ;;  %v3315_v39 = vand.u32 4294901760, %v2716_v51 }
 0x212   :  { %v306_v26 = vsel %vm302_vm6, %v299_v25, 0.0  ;;  %v3294_v23 = vand.u32 4294901760, %v2668_v19  ;;  %v2680_v25 = vpack.c.bf16 %v3291_v18, %v3292_v17  ;;  %v2696_v18 = vld [vmem:[#allocation8 + $0xe0] sm:$0xff]  ;;  %v2698_v17 = vld [vmem:[#allocation8 + $0xf0] sm:$0xff]  ;;  %v2708_v1 = vpack.c.bf16 %v3301_v7, %v3302_v8 }
 0x213   :  { %307 = vadd.xlane.f32.xlu0 %v306_v26  ;;  %3441 = vst [vmem:[#allocation37_spill] sm:$0xff] %v2602_v41  ;;  %2022 = vmatpush1.bf16.msra.mxu0 %v2602_v41  ;;  %v3314_v34 = vand.u32 4294901760, %v2718_v50  ;;  %v2724_v7 = vld [vmem:[#allocation8 + $0x100] sm:$0xff]  ;;  %v2726_v8 = vld [vmem:[#allocation8 + $0x110] sm:$0xff]  ;;  %v3470_v31 = vand.u32 4294901760, %v2614_v53 }
 0x214   :  { %1830 = vmatpush1.bf16.msra.mxu1 %v2602_v41  ;;  %2024 = vmatprep.subr.bf16.mxu0 %v2624_v3  ;;  %3446 = vst [vmem:[#allocation42_spill] sm:$0xff] %v2680_v25  ;;  %v2686_v26 = vpack.c.bf16 %v3293_v24, %v3294_v23  ;;  %v3304_v24 = vand.u32 4294901760, %v2696_v18  ;;  %v3303_v23 = vand.u32 4294901760, %v2698_v17  ;;  %3448 = vst [vmem:[#allocation44_spill] sm:$0xff] %v2708_v1 }
 0x215   :  { %1832 = vmatprep.subr.bf16.mxu1 %v2624_v3  ;;  %v2736_v30 = vpack.c.bf16 %v3314_v34, %v3315_v39  ;;  %v2752_v34 = vld [vmem:[#allocation8 + $0x120] sm:$0xff]  ;;  %v2754_v39 = vld [vmem:[#allocation8 + $0x130] sm:$0xff] }
 0x216   :  { %3447 = vst [vmem:[#allocation43_spill] sm:$0xff] %v2686_v26  ;;  %v2714_v63 = vpack.c.bf16 %v3303_v23, %v3304_v24  ;;  %v3317_v23 = vand.u32 4294901760, %v2724_v7  ;;  %v3316_v24 = vand.u32 4294901760, %v2726_v8 }
 0x217   :  { %2026 = vmatpush1.bf16.msra.mxu0 %v2630_v4  ;;  %3450 = vst [vmem:[#allocation46_spill] sm:$0xff] %v2736_v30 }
 0x218   :  { %1834 = vmatpush1.bf16.msra.mxu1 %v2630_v4  ;;  %2028 = vmatprep.subr.bf16.mxu0 %v2652_v13  ;;  %3449 = vst [vmem:[#allocation45_spill] sm:$0xff] %v2714_v63  ;;  %v2742_v29 = vpack.c.bf16 %v3316_v24, %v3317_v23  ;;  %v521_v24 = vand.u32 4294901760, %v2752_v34  ;;  %v525_v23 = vand.u32 4294901760, %v2754_v39  ;;  %v417_v4 = vld [vmem:[#allocation8 + $0x150] sm:$0xff] }
 0x219   :  { %1836 = vmatprep.subr.bf16.mxu1 %v2652_v13  ;;  %v415_v13 = vld [vmem:[#allocation8 + $0x140] sm:$0xff]  ;;  %v533_v41 = vand.u32 4294901760, %v417_v4 }
 0x21a   :  { %3451 = vst [vmem:[#allocation47_spill] sm:$0xff] %v2742_v29  ;;  %v529_v3 = vand.u32 4294901760, %v415_v13 }
 0x21b   :  { %2030 = vmatpush1.bf16.msra.mxu0 %v2658_v14 }
 0x21c   :  { %1838 = vmatpush1.bf16.msra.mxu1 %v2658_v14  ;;  %2032 = vmatprep.subr.bf16.mxu0 %v2680_v25 }
 0x21d   :  { %1840 = vmatprep.subr.bf16.mxu1 %v2680_v25  ;;  %v418_v25 = vld [vmem:[#allocation8 + $0x158] sm:$0xff] }
 0x21f   :  { %2034 = vmatpush1.bf16.msra.mxu0 %v2686_v26 }
 0x220   :  { %1842 = vmatpush1.bf16.msra.mxu1 %v2686_v26  ;;  %2036 = vmatprep.subr.bf16.mxu0 %v2708_v1  ;;  %v416_v26 = vld [vmem:[#allocation8 + $0x148] sm:$0xff] }
 0x221   :  { %1844 = vmatprep.subr.bf16.mxu1 %v2708_v1  ;;  %v2766_v1 = vpack.c.bf16 %v525_v23, %v521_v24  ;;  %v527_v14 = vand.u32 4294901760, %v416_v26 }
 0x223   :  { %2038 = vmatpush1.bf16.msra.mxu0 %v2714_v63  ;;  %3453 = vst [vmem:[#allocation49_spill] sm:$0xff] %v2766_v1 }
 0x224   :  { %1846 = vmatpush1.bf16.msra.mxu1 %v2714_v63  ;;  %2040 = vmatprep.subr.bf16.mxu0 %v2736_v30  ;;  %v3328_v63 = vand.u32 4294901760, %v2746_v47 }
 0x225   :  { %1848 = vmatprep.subr.bf16.mxu1 %v2736_v30 }
 0x226   :  { %v2764_v30 = vpack.c.bf16 %v3328_v63, %v3329_v37  ;;  %v2774_v37 = vpack.c.bf16 %v533_v41, %v529_v3 }
 0x227   :  { %2042 = vmatpush1.bf16.msra.mxu0 %v2742_v29 }
 0x228   :  { %1850 = vmatpush1.bf16.msra.mxu1 %v2742_v29  ;;  %3452 = vst [vmem:[#allocation48_spill] sm:$0xff] %v2764_v30  ;;  %2044 = vmatprep.subr.bf16.mxu0 %v2764_v30  ;;  %v531_v29 = vand.u32 4294901760, %v418_v25  ;;  %3455 = vst [vmem:[#allocation51_spill] sm:$0xff] %v2774_v37 }
 0x229   :  { %1852 = vmatprep.subr.bf16.mxu1 %v2764_v30  ;;  %v535_v30 = vand.u32 4294901760, %v420_v40 }
 0x22a   :  { %v2772_v63 = vpack.c.bf16 %v531_v29, %v527_v14 }
 0x22b   :  { %2046 = vmatpush1.bf16.msra.mxu0 %v2766_v1 }
 0x22c   :  { %1854 = vmatpush1.bf16.msra.mxu1 %v2766_v1  ;;  %3454 = vst [vmem:[#allocation50_spill] sm:$0xff] %v2772_v63  ;;  %2048 = vmatprep.subr.bf16.mxu0 %v2772_v63  ;;  %v2780_v1 = vpack.c.bf16 %v539_v57, %v535_v30 }
 0x22d   :  { %1856 = vmatprep.subr.bf16.mxu1 %v2772_v63  ;;  %v2790_v63 = vsub.f32 %v2582_v28, %v3459_v59  ;;  %v2810_v59 = vsub.f32 %v2606_v49, %v3466_v27  ;;  %v3468_v28 = vand.u32 4294901760, %v2612_v52  ;;  %v2831_v49 = vsub.f32 %v2634_v6, %v3474_v48 }
 0x22e   :  { %3456 = vst [vmem:[#allocation52_spill] sm:$0xff] %v2780_v1  ;;  %v3479_v6 = vand.u32 4294901760, %v2662_v16 }
 0x22f   :  { %2050 = vmatpush1.bf16.msra.mxu0 %v2774_v37  ;;  %3460 = vst [vmem:[#allocation54_spill] sm:$0xff] %v2790_v63  ;;  %3467 = vst [vmem:[#allocation57_spill] sm:$0xff] %v2810_v59  ;;  %v2815_v58 = vsub.f32 %v2612_v52, %v3468_v28  ;;  %v3476_v52 = vand.u32 4294901760, %v2640_v9 }
 0x230   :  { %1858 = vmatpush1.bf16.msra.mxu1 %v2774_v37  ;;  %v3463_v37 = vand.u32 4294901760, %v2588_v32  ;;  %2052 = vmatprep.subr.bf16.mxu0 %v2780_v1  ;;  %3475 = vst [vmem:[#allocation61_spill] sm:$0xff] %v2831_v49 }
 0x231   :  { %3469 = vst [vmem:[#allocation58_spill] sm:$0xff] %v2815_v58  ;;  %v2836_v27 = vsub.f32 %v2640_v9, %v3476_v52  ;;  %1860 = vmatprep.subr.bf16.mxu1 %v2780_v1  ;;  %v3480_v9 = vand.u32 4294901760, %v2668_v19  ;;  %v3492_v1 = vand.u32 4294901760, %v2744_v22 }
 0x232   :  { %v2800_v55 = vsub.f32 %v2588_v32, %v3463_v37  ;;  %v2820_v37 = vsub.f32 %v2614_v53, %v3470_v31  ;;  %v2826_v32 = vsub.f32 %v2632_v5, %v3472_v46  ;;  %v3477_v53 = vand.u32 4294901760, %v2642_v10 }
 0x233   :  { %v3478_v5 = vand.u32 4294901760, %v2660_v15  ;;  %v2852_v46 = vsub.f32 %v2662_v16, %v3479_v6  ;;  %v2857_v48 = vsub.f32 %v2668_v19, %v3480_v9  ;;  %v3484_v6 = vand.u32 4294901760, %v2696_v18 }
 0x234   :  { %3464 = vst [vmem:[#allocation56_spill] sm:$0xff] %v2800_v55  ;;  %3471 = vst [vmem:[#allocation59_spill] sm:$0xff] %v2820_v37  ;;  %v2841_v28 = vsub.f32 %v2642_v10, %v3477_v53  ;;  %v3481_v10 = vand.u32 4294901760, %v2670_v20  ;;  %v3482_v53 = vand.u32 4294901760, %v2688_v12  ;;  %v3485_v9 = vand.u32 4294901760, %v2698_v17 }
 0x235   :  { %3473 = vst [vmem:[#allocation60_spill] sm:$0xff] %v2826_v32  ;;  %v2847_v31 = vsub.f32 %v2660_v15, %v3478_v5  ;;  %v3483_v5 = vand.u32 4294901760, %v2690_v11  ;;  %v2877_v19 = vsub.f32 %v2696_v18, %v3484_v6  ;;  %v3490_v6 = vand.u32 4294901760, %v2726_v8 }
 0x236   :  { %v2862_v52 = vsub.f32 %v2670_v20, %v3481_v10  ;;  %v2867_v15 = vsub.f32 %v2688_v12, %v3482_v53  ;;  %v2882_v20 = vsub.f32 %v2698_v17, %v3485_v9  ;;  %v3486_v10 = vand.u32 4294901760, %v2716_v51  ;;  %v424_v9 = vld [vmem:[#allocation8 + $0x188] sm:$0xff] }
 0x237   :  { %v2872_v16 = vsub.f32 %v2690_v11, %v3483_v5  ;;  %v3487_v53 = vand.u32 4294901760, %v2718_v50  ;;  %v3488_v5 = vand.u32 4294901760, %v2724_v7  ;;  %v2902_v17 = vsub.f32 %v2726_v8, %v3490_v6  ;;  %v423_v8 = vld [vmem:[#allocation8 + $0x180] sm:$0xff]  ;;  %v425_v6 = vld [vmem:[#allocation8 + $0x190] sm:$0xff] }
 0x238   :  { %v2887_v12 = vsub.f32 %v2716_v51, %v3486_v10  ;;  %v2907_v51 = vsub.f32 %v2744_v22, %v3492_v1  ;;  %v3494_v10 = vand.u32 4294901760, %v2746_v47  ;;  %v2924_v22 = vsub.f32 %v415_v13, %v529_v3  ;;  %v429_v3 = vld [vmem:[#allocation8 + $0x1b0] sm:$0xff] }
 0x239   :  { %v2892_v11 = vsub.f32 %v2718_v50, %v3487_v53  ;;  %v2897_v18 = vsub.f32 %v2724_v7, %v3488_v5  ;;  %3491 = vst [vmem:[#allocation63_spill] sm:$0xff] %v2902_v17  ;;  %v2915_v53 = vsub.f32 %v2752_v34, %v521_v24  ;;  %v2918_v7 = vsub.f32 %v2754_v39, %v525_v23  ;;  %v426_v5 = vld [vmem:[#allocation8 + $0x198] sm:$0xff] }
 0x23a   :  { %3493 = vst [vmem:[#allocation64_spill] sm:$0xff] %v2907_v51  ;;  %v2912_v50 = vsub.f32 %v2746_v47, %v3494_v10  ;;  %v2920_v17 = vsub.f32 %v416_v26, %v527_v14  ;;  %3496 = vst [vmem:[#allocation66_spill] sm:$0xff] %v2924_v22  ;;  %v2926_v1 = vsub.f32 %v417_v4, %v533_v41  ;;  %v428_v51 = vld [vmem:[#allocation8 + $0x1a8] sm:$0xff]  ;;  %v430_v47 = vld [vmem:[#allocation8 + $0x1b8] sm:$0xff]  ;;  %v543_v14 = vand.u32 4294901760, %v424_v9 }
 0x23b   :  { %3489 = vst [vmem:[#allocation62_spill] sm:$0xff] %v2897_v18  ;;  %v2922_v18 = vsub.f32 %v418_v25, %v531_v29  ;;  %v427_v10 = vld [vmem:[#allocation8 + $0x1a0] sm:$0xff]  ;;  %v2930_v34 = vsub.f32 %v422_v62, %v539_v57  ;;  %v2932_v39 = vpack.c.bf16 %v541_v33, %v537_v42  ;;  %v2934_v23 = vsub.f32 %v419_v54, %v537_v42  ;;  %v432_v57 = vld [vmem:[#allocation8 + $0x1c8] sm:$0xff]  ;;  %v434_v62 = vld [vmem:[#allocation8 + $0x1d8] sm:$0xff] }
 0x23c   :  { %3495 = vst [vmem:[#allocation65_spill] sm:$0xff] %v2912_v50  ;;  %3497 = vst [vmem:[#allocation67_spill] sm:$0xff] %v2926_v1  ;;  %v2928_v50 = vsub.f32 %v420_v40, %v535_v30  ;;  %v2936_v24 = vsub.f32 %v421_v44, %v541_v33  ;;  %v547_v29 = vand.u32 4294901760, %v426_v5  ;;  %v545_v25 = vand.u32 4294901760, %v423_v8  ;;  %v431_v54 = vld [vmem:[#allocation8 + $0x1c0] sm:$0xff]  ;;  %v433_v26 = vld [vmem:[#allocation8 + $0x1d0] sm:$0xff] }
 0x23d   :  { %3499 = vst [vmem:[#allocation69_spill] sm:$0xff] %v2930_v34  ;;  %3500 = vst [vmem:[#allocation70_spill] sm:$0xff] %v2932_v39  ;;  %2054 = vmatpush1.bf16.msra.mxu0 %v2932_v39  ;;  %1862 = vmatpush1.bf16.msra.mxu1 %v2932_v39  ;;  %v549_v41 = vand.u32 4294901760, %v425_v6  ;;  %v551_v4 = vand.u32 4294901760, %v428_v51  ;;  %v555_v30 = vand.u32 4294901760, %v430_v47  ;;  %v553_v40 = vand.u32 4294901760, %v427_v10 }
 0x23e   :  { %3498 = vst [vmem:[#allocation68_spill] sm:$0xff] %v2928_v50  ;;  %3501 = vst [vmem:[#allocation71_spill] sm:$0xff] %v2934_v23  ;;  %v2940_v13 = vpack.c.bf16 %v547_v29, %v543_v14  ;;  %v2942_v42 = vsub.f32 %v424_v9, %v543_v14  ;;  %v2944_v33 = vsub.f32 %v426_v5, %v547_v29  ;;  %v438_v1 = vld [vmem:[#allocation8 + $0x1f8] sm:$0xff]  ;;  %v557_v5 = vand.u32 4294901760, %v429_v3 }
 0x23f   :  { %3502 = vst [vmem:[#allocation72_spill] sm:$0xff] %v2936_v24  ;;  %v2946_v44 = vsub.f32 %v423_v8, %v545_v25  ;;  %v436_v24 = vld [vmem:[#allocation8 + $0x1e8] sm:$0xff]  ;;  %v2948_v23 = vpack.c.bf16 %v549_v41, %v545_v25  ;;  %v2950_v39 = vsub.f32 %v425_v6, %v549_v41  ;;  %v2952_v34 = vpack.c.bf16 %v555_v30, %v551_v4 }
 0x240   :  { %3503 = vst [vmem:[#allocation73_spill] sm:$0xff] %v2940_v13  ;;  %3504 = vst [vmem:[#allocation74_spill] sm:$0xff] %v2942_v42  ;;  %v2954_v50 = vsub.f32 %v428_v51, %v551_v4  ;;  %2056 = vmatprep.subr.bf16.mxu0 %v2940_v13  ;;  %1864 = vmatprep.subr.bf16.mxu1 %v2940_v13  ;;  %v2958_v9 = vsub.f32 %v430_v47, %v555_v30  ;;  %v559_v14 = vand.u32 4294901760, %v432_v57  ;;  %v435_v30 = vld [vmem:[#allocation8 + $0x1e0] sm:$0xff]  ;;  %v437_v13 = vld [vmem:[#allocation8 + $0x1f0] sm:$0xff] }
 0x241   :  { %3505 = vst [vmem:[#allocation75_spill] sm:$0xff] %v2944_v33  ;;  %3506 = vst [vmem:[#allocation76_spill] sm:$0xff] %v2946_v44  ;;  %v2960_v8 = vsub.f32 %v427_v10, %v553_v40  ;;  %2058 = vmatpush1.bf16.msra.mxu0 %v2948_v23  ;;  %1866 = vmatpush1.bf16.msra.mxu1 %v2948_v23  ;;  %v563_v6 = vand.u32 4294901760, %v434_v62  ;;  %v561_v29 = vand.u32 4294901760, %v431_v54  ;;  %v565_v25 = vand.u32 4294901760, %v433_v26 }
 0x242   :  { %3507 = vst [vmem:[#allocation77_spill] sm:$0xff] %v2948_v23  ;;  %3508 = vst [vmem:[#allocation78_spill] sm:$0xff] %v2950_v39  ;;  %v567_v51 = vand.u32 4294901760, %v436_v24  ;;  %2060 = vmatprep.subr.bf16.mxu0 %v2952_v34  ;;  %v2965_v41 = vpack.c.bf16 %v557_v5, %v553_v40  ;;  %v2967_v4 = vsub.f32 %v429_v3, %v557_v5  ;;  %1868 = vmatprep.subr.bf16.mxu1 %v2952_v34 }
 0x243   :  { %3509 = vst [vmem:[#allocation79_spill] sm:$0xff] %v2952_v34  ;;  %3510 = vst [vmem:[#allocation80_spill] sm:$0xff] %v2954_v50  ;;  %v2970_v47 = vsub.f32 %v432_v57, %v559_v14  ;;  %v571_v10 = vand.u32 4294901760, %v438_v1  ;;  %v2974_v23 = vsub.f32 %v434_v62, %v563_v6  ;;  %v2978_v50 = vpack.c.bf16 %v565_v25, %v561_v29 }
 0x244   :  { %3511 = vst [vmem:[#allocation81_spill] sm:$0xff] %v2958_v9  ;;  %3512 = vst [vmem:[#allocation82_spill] sm:$0xff] %v2960_v8  ;;  %v2972_v8 = vpack.c.bf16 %v563_v6, %v559_v14  ;;  %v2976_v9 = vsub.f32 %v431_v54, %v561_v29  ;;  %v2980_v39 = vsub.f32 %v433_v26, %v565_v25  ;;  %v569_v57 = vand.u32 4294901760, %v435_v30 }
 0x245   :  { %3513 = vst [vmem:[#allocation83_spill] sm:$0xff] %v2965_v41  ;;  %3514 = vst [vmem:[#allocation84_spill] sm:$0xff] %v2967_v4  ;;  %v2982_v40 = vsub.f32 %v436_v24, %v567_v51  ;;  %v2984_v3 = vsub.f32 %v438_v1, %v571_v10  ;;  %2062 = vmatpush1.bf16.msra.mxu0 %v2965_v41  ;;  %1870 = vmatpush1.bf16.msra.mxu1 %v2965_v41  ;;  %v573_v5 = vand.u32 4294901760, %v437_v13 }
 0x246   :  { %3515 = vst [vmem:[#allocation85_spill] sm:$0xff] %v2970_v47  ;;  %3516 = vst [vmem:[#allocation86_spill] sm:$0xff] %v2972_v8  ;;  %v594_v14 = vand.u32 4294901760, %v2524_v35  ;;  %v606_v62 = vand.u32 4294901760, %v2526_v36  ;;  %2064 = vmatprep.subr.bf16.mxu0 %v2972_v8  ;;  %1872 = vmatprep.subr.bf16.mxu1 %v2972_v8  ;;  %v2992_v54 = vpack.c.bf16 %v571_v10, %v567_v51  ;;  %v690_v4 = vand.u32 4294901760, %v2805_v61 }
 0x247   :  { %3517 = vst [vmem:[#allocation87_spill] sm:$0xff] %v2974_v23  ;;  %3518 = vst [vmem:[#allocation88_spill] sm:$0xff] %v2976_v9  ;;  %v2994_v24 = vsub.f32 %v435_v30, %v569_v57  ;;  %v2996_v1 = vsub.f32 %v437_v13, %v573_v5  ;;  %v3002_v29 = vpack.c.bf16 %v573_v5, %v569_v57  ;;  %v3534_v9 = vld [vmem:[#allocation33_spill] sm:$0xff] }
 0x248   :  { %3519 = vst [vmem:[#allocation89_spill] sm:$0xff] %v2978_v50  ;;  %3520 = vst [vmem:[#allocation90_spill] sm:$0xff] %v2980_v39  ;;  %v595_v26 = vsub.f32 %v2524_v35, %v594_v14  ;;  %v607_v6 = vsub.f32 %v2526_v36, %v606_v62  ;;  %v2071_v25 = vpack.c.bf16 %v606_v62, %v594_v14  ;;  %v648_v23 = vand.u32 4294901760, %v3534_v9 }
 0x249   :  { %3521 = vst [vmem:[#allocation91_spill] sm:$0xff] %v2982_v40  ;;  %3522 = vst [vmem:[#allocation92_spill] sm:$0xff] %v2984_v3  ;;  %2066 = vmatpush1.bf16.msra.mxu0 %v2978_v50  ;;  %1874 = vmatpush1.bf16.msra.mxu1 %v2978_v50 }
 0x24a   :  { %3523 = vst [vmem:[#allocation93_spill] sm:$0xff] %v2992_v54  ;;  %3524 = vst [vmem:[#allocation94_spill] sm:$0xff] %v2994_v24  ;;  %2068 = vmatprep.subr.bf16.mxu0 %v2992_v54  ;;  %1876 = vmatprep.subr.bf16.mxu1 %v2992_v54  ;;  %v596_v51 = vand.u32 4294901760, %v595_v26  ;;  %v608_v10 = vand.u32 4294901760, %v607_v6  ;;  %v2373_v54 = vmov 839922192  }
 0x24b   :  { %3525 = vst [vmem:[#allocation95_spill] sm:$0xff] %v2996_v1  ;;  %3526 = vst [vmem:[#allocation96_spill] sm:$0xff] %v3002_v29  ;;  %v324_v14 = vunpack.c.l.s4 %v2373_v54 }
 0x24c   :  { %v1879_v30 = vpack.c.bf16 %v608_v10, %v596_v51 }
 0x24d   :  { %2070 = vmatpush1.bf16.msra.mxu0 %v3002_v29  ;;  %1878 = vmatpush1.bf16.msra.mxu1 %v3002_v29  ;;  %v325_v26 = vunpack.c.0.s8 %v324_v14 }
 0x24e   :  { %2072 = vmatprep.subr.bf16.mxu0 %v2071_v25  ;;  %1880 = vmatprep.subr.bf16.mxu1 %v1879_v30 }
 0x24f   :  { %v328_v6 = vsub.s32 %v325_v26, %v2491_v21 }
 0x29e   :  { %v305_v13 = vpop.xlane.xlu1 %304 }
 0x29f   :  { %v1811_v8 = vmul.f32 -1.442695, %v305_v13 }
 0x2a0   :  { %v308_v41 = vpop.xlane.xlu0 %307 }
 0x2a1   :  { %2227 = vpow2.f32 %v1811_v8  ;;  %v1812_v57 = vmul.f32 -1.442695, %v308_v41 }
 0x2a3   :  { %2229 = vpow2.f32 %v1812_v57 }
 0x2ab   :  { %v2228_v5 = vpop.eup %2227 }
 0x2ac   :  { %v315_v50 = vadd.f32 1.0, %v2228_v5 }
 0x2ad   :  { %v2230_v34 = vpop.eup %2229 }
 0x2ae   :  { %2231 = vrcp.f32 %v315_v50  ;;  %v316_v62 = vadd.f32 1.0, %v2230_v34 }
 0x2b0   :  { %2233 = vrcp.f32 %v316_v62 }
 0x2b8   :  { %v2232_v51 = vpop.eup %2231 }
 0x2b9   :  { %v329_v25 = vrot.slane %v2232_v51, %v328_v6 }
 0x2ba   :  { %v2234_v10 = vpop.eup %2233 }
 0x2bb   :  { %v339_v30 = vmul.f32 %v329_v25, %v2473_v0  ;;  %v336_v13 = vrot.slane %v2234_v10, %v328_v6 }
 0x2bd   :  { %v347_v8 = vsel %vm84_vm0, %v339_v30, -inf  ;;  %v340_v41 = vmul.f32 %v336_v13, %v2475_v2  ;;  %v343_v57 = vcombine.high %v339_v30, %v339_v30  ;;  %v600_v30 = vand.u32 4294901760, %v2528_v38 }
 0x2be   :  { %v348_v5 = vrot.slane %v347_v8, 4  ;;  %v612_v13 = vand.u32 4294901760, %v2532_v43 }
 0x2bf   :  { %v361_v54 = vsel %vm84_vm0, %v340_v41, -inf  ;;  %v344_v50 = vcombine.high %v340_v41, %v340_v41  ;;  %v354_v34 = vsel %vm84_vm0, %v343_v57, -inf }
 0x2c0   :  { %v362_v14 = vrot.slane %v361_v54, 4  ;;  %v355_v62 = vrot.slane %v354_v34, 4  ;;  %v349_v21 = vmax.f32 %v347_v8, %v348_v5 }
 0x2c1   :  { %v368_v26 = vsel %vm84_vm0, %v344_v50, -inf  ;;  %v618_v50 = vand.u32 4294901760, %v2536_v45 }
 0x2c2   :  { %v356_v51 = vmax.f32 %v354_v34, %v355_v62  ;;  %v369_v29 = vrot.slane %v368_v26, 4  ;;  %v350_v0 = vrot.slane %v349_v21, 2  ;;  %v363_v6 = vmax.f32 %v361_v54, %v362_v14  ;;  %v3527_v34 = vld [vmem:[#allocation26_spill] sm:$0xff] }
 0x2c3   :  { %v630_v62 = vand.u32 4294901760, %v3527_v34  ;;  %v601_v54 = vsub.f32 %v2528_v38, %v600_v30 }
 0x2c4   :  { %v357_v25 = vrot.slane %v356_v51, 2  ;;  %v370_v10 = vmax.f32 %v368_v26, %v369_v29  ;;  %v351_v36 = vmax.f32 %v349_v21, %v350_v0  ;;  %v364_v2 = vrot.slane %v363_v6, 2  ;;  %v3528_v0 = vld [vmem:[#allocation28_spill] sm:$0xff] }
 0x2c5   :  { %v613_v26 = vsub.f32 %v2532_v43, %v612_v13  ;;  %v624_v3 = vand.u32 4294901760, %v3528_v0  ;;  %v631_v40 = vsub.f32 %v3527_v34, %v630_v62 }
 0x2c6   :  { %v358_v41 = vmax.f32 %v356_v51, %v357_v25  ;;  %v371_v35 = vrot.slane %v370_v10, 2  ;;  %v352_v57 = vrot.slane %v351_v36, 1  ;;  %v365_v1 = vmax.f32 %v363_v6, %v364_v2 }
 0x2c7   :  { %v614_v39 = vand.u32 4294901760, %v613_v26 }
 0x2c8   :  { %v359_v24 = vrot.slane %v358_v41, 1  ;;  %v372_v8 = vmax.f32 %v370_v10, %v371_v35  ;;  %v366_v5 = vrot.slane %v365_v1, 1  ;;  %v353_v14 = vmax.f32 %v351_v36, %v352_v57  ;;  %v3530_v36 = vld [vmem:[#allocation29_spill] sm:$0xff]  ;;  %v3531_v57 = vld [vmem:[#allocation31_spill] sm:$0xff] }
 0x2c9   :  { %v602_v35 = vand.u32 4294901760, %v601_v54  ;;  %v619_v10 = vsub.f32 %v2536_v45, %v618_v50  ;;  %v2075_v54 = vpack.c.bf16 %v630_v62, %v618_v50  ;;  %v3535_v50 = vld [vmem:[#allocation34_spill] sm:$0xff] }
 0x2ca   :  { %v373_v29 = vrot.slane %v372_v8, 1  ;;  %v367_v21 = vmax.f32 %v365_v1, %v366_v5  ;;  %v360_v51 = vmax.f32 %v358_v41, %v359_v24  ;;  %v636_v1 = vand.u32 4294901760, %v3530_v36 }
 0x2cb   :  { %v642_v5 = vand.u32 4294901760, %v3531_v57  ;;  %v625_v41 = vsub.f32 %v3528_v0, %v624_v3  ;;  %v1881_v34 = vpack.c.bf16 %v614_v39, %v602_v35  ;;  %v660_v62 = vand.u32 4294901760, %v3535_v50 }
 0x2cc   :  { %v374_v25 = vmax.f32 %v372_v8, %v373_v29  ;;  %v443_v6 = vsel %vm123_vm1, %v367_v21, %v353_v14  ;;  %v2073_v8 = vpack.c.bf16 %v612_v13, %v600_v30  ;;  %v3533_v29 = vld [vmem:[#allocation32_spill] sm:$0xff]  ;;  %v637_v45 = vsub.f32 %v3530_v36, %v636_v1 }
 0x2cd   :  { %v3023_v2 = vand.u32 4294901760, %v443_v6  ;;  %v654_v14 = vand.u32 4294901760, %v3533_v29  ;;  %v2077_v30 = vpack.c.bf16 %v636_v1, %v624_v3  ;;  %v626_v13 = vand.u32 4294901760, %v625_v41 }
 0x2ce   :  { %v444_v38 = vsel %vm123_vm1, %v374_v25, %v360_v51  ;;  %v620_v51 = vand.u32 4294901760, %v619_v10  ;;  %v632_v25 = vand.u32 4294901760, %v631_v40  ;;  %v666_v10 = vand.u32 4294901760, %v2785_v60 }
 0x2cf   :  { %3529 = vst [vmem:[#allocation97_spill] sm:$0xff] %v3023_v2  ;;  %v3030_v43 = vand.u32 4294901760, %v444_v38  ;;  %v3033_v24 = vsub.f32 %v443_v6, %v3023_v2  ;;  %v643_v6 = vsub.f32 %v3531_v57, %v642_v5  ;;  %v655_v2 = vsub.f32 %v3533_v29, %v654_v14 }
 0x2d0   :  { %v678_v39 = vand.u32 4294901760, %v2790_v63  ;;  %v1883_v35 = vpack.c.bf16 %v632_v25, %v620_v51  ;;  %v672_v57 = vand.u32 4294901760, %v2795_v56  ;;  %v684_v36 = vand.u32 4294901760, %v2800_v55 }
 0x2d1   :  { %3532 = vst [vmem:[#allocation98_spill] sm:$0xff] %v3033_v24  ;;  %v3038_v21 = vsub.f32 %v444_v38, %v3030_v43  ;;  %v583_v26 = vand.u32 4294901760, %v3033_v24  ;;  %v2079_v3 = vpack.c.bf16 %v654_v14, %v642_v5  ;;  %v638_v1 = vand.u32 4294901760, %v637_v45 }
 0x2d2   :  { %v644_v41 = vand.u32 4294901760, %v643_v6  ;;  %v661_v47 = vsub.f32 %v3535_v50, %v660_v62  ;;  %v656_v25 = vand.u32 4294901760, %v655_v2  ;;  %v679_v45 = vsub.f32 %v2790_v63, %v678_v39 }
 0x2d3   :  { %v577_v0 = vand.u32 4294901760, %v3038_v21  ;;  %v584_v38 = vsub.f32 %v3033_v24, %v583_v26  ;;  %v649_v24 = vsub.f32 %v3534_v9, %v648_v23  ;;  %v673_v5 = vsub.f32 %v2795_v56, %v672_v57 }
 0x2d4   :  { %v696_v14 = vand.u32 4294901760, %v2815_v58  ;;  %v708_v6 = vand.u32 4294901760, %v2820_v37  ;;  %v2081_v50 = vpack.c.bf16 %v660_v62, %v648_v23  ;;  %v726_v2 = vand.u32 4294901760, %v2831_v49 }
 0x2d5   :  { %1319 = vmatprep.mubr.f32.mxu0 %v577_v0  ;;  %v578_v40 = vsub.f32 %v3038_v21, %v577_v0  ;;  %v702_v0 = vand.u32 4294901760, %v2810_v59  ;;  %v585_v51 = vand.u32 4294901760, %v584_v38  ;;  %v650_v38 = vand.u32 4294901760, %v649_v24 }
 0x2d6   :  { %1323 = vmatmul.mubr.f32.vlgmr.msra.gmra.mrb[0].mxu0 %v583_v26  ;;  %v667_v26 = vsub.f32 %v2785_v60, %v666_v10  ;;  %v662_v63 = vand.u32 4294901760, %v661_v47  ;;  %v2083_v60 = vpack.c.bf16 %v678_v39, %v666_v10  ;;  %v674_v23 = vand.u32 4294901760, %v673_v5 }
 0x2d7   :  { %2074 = vmatpush1.bf16.msra.mxu0 %v2073_v8  ;;  %1586 = vmatprep.mubr.f32.mxu0 %v3030_v43  ;;  %v579_v29 = vand.u32 4294901760, %v578_v40  ;;  %v685_v8 = vsub.f32 %v2800_v55, %v684_v36  ;;  %v1885_v40 = vpack.c.bf16 %v638_v1, %v626_v13  ;;  %v703_v56 = vsub.f32 %v2810_v59, %v702_v0 }
 0x2d8   :  { %2076 = vmatprep.subr.bf16.mxu0 %v2075_v54  ;;  %v714_v54 = vand.u32 4294901760, %v2826_v32  ;;  %v1887_v55 = vpack.c.bf16 %v656_v25, %v644_v41  ;;  %v680_v13 = vand.u32 4294901760, %v679_v45  ;;  %v697_v1 = vsub.f32 %v2815_v58, %v696_v14 }
 0x2d9   :  { %580 = vmatprep.mubr.f32.mxu1 %v579_v29  ;;  %v691_v29 = vsub.f32 %v2805_v61, %v690_v4  ;;  %v686_v62 = vand.u32 4294901760, %v685_v8  ;;  %v720_v47 = vand.u32 4294901760, %v2836_v27  ;;  %v732_v24 = vand.u32 4294901760, %v2841_v28 }
 0x2da   :  { %586 = vmatmul.mubr.f32.vlgmr.msra.gmra.mrb[0].mxu1 %v585_v51  ;;  %v668_v51 = vand.u32 4294901760, %v667_v26  ;;  %v727_v59 = vsub.f32 %v2831_v49, %v726_v2  ;;  %v1889_v10 = vpack.c.bf16 %v662_v63, %v650_v38  ;;  %v2085_v39 = vpack.c.bf16 %v684_v36, %v672_v57 }
 0x2db   :  { %1882 = vmatpush1.bf16.msra.mxu1 %v1881_v34  ;;  %2078 = vmatpush1.bf16.msra.mxu0 %v2077_v30  ;;  %v709_v34 = vsub.f32 %v2820_v37, %v708_v6  ;;  %v715_v30 = vsub.f32 %v2826_v32, %v714_v54  ;;  %v2087_v25 = vpack.c.bf16 %v702_v0, %v690_v4  ;;  %v738_v26 = vand.u32 4294901760, %v2847_v31 }
 0x2dc   :  { %977 = vmatprep.mubr.f32.mxu1 %v3030_v43  ;;  %1884 = vmatprep.subr.bf16.mxu1 %v1883_v35  ;;  %v692_v35 = vand.u32 4294901760, %v691_v29  ;;  %v1891_v41 = vpack.c.bf16 %v680_v13, %v668_v51  ;;  %v750_v45 = vand.u32 4294901760, %v2852_v46  ;;  %v1893_v5 = vpack.c.bf16 %v686_v62, %v674_v23 }
 0x2dd   :  { %2080 = vmatprep.subr.bf16.mxu0 %v2079_v3  ;;  %v704_v3 = vand.u32 4294901760, %v703_v56  ;;  %v2089_v8 = vpack.c.bf16 %v708_v6, %v696_v14  ;;  %v698_v37 = vand.u32 4294901760, %v697_v1  ;;  %v710_v32 = vand.u32 4294901760, %v709_v34 }
 0x2de   :  { %v716_v58 = vand.u32 4294901760, %v715_v30  ;;  %v728_v49 = vand.u32 4294901760, %v727_v59  ;;  %v733_v63 = vsub.f32 %v2841_v28, %v732_v24  ;;  %v2091_v56 = vpack.c.bf16 %v726_v2, %v714_v54 }
 0x2df   :  { %1886 = vmatpush1.bf16.msra.mxu1 %v1885_v40  ;;  %2082 = vmatpush1.bf16.msra.mxu0 %v2081_v50  ;;  %v721_v50 = vsub.f32 %v2836_v27, %v720_v47  ;;  %v756_v4 = vand.u32 4294901760, %v2862_v52  ;;  %v739_v36 = vsub.f32 %v2847_v31, %v738_v26  ;;  %v751_v57 = vsub.f32 %v2852_v46, %v750_v45 }
 0x2e0   :  { %1888 = vmatprep.subr.bf16.mxu1 %v1887_v55  ;;  %2084 = vmatprep.subr.bf16.mxu0 %v2083_v60  ;;  %v1895_v55 = vpack.c.bf16 %v704_v3, %v692_v35  ;;  %v744_v60 = vand.u32 4294901760, %v2857_v48  ;;  %v762_v59 = vand.u32 4294901760, %v2867_v15  ;;  %v774_v0 = vand.u32 4294901760, %v2872_v16 }
 0x2e1   :  { %v1897_v14 = vpack.c.bf16 %v710_v32, %v698_v37  ;;  %v2093_v6 = vpack.c.bf16 %v732_v24, %v720_v47  ;;  %v768_v40 = vand.u32 4294901760, %v2877_v19  ;;  %v780_v54 = vand.u32 4294901760, %v2882_v20  ;;  %v3536_v24 = vld [vmem:[#allocation62_spill] sm:$0xff] }
 0x2e2   :  { %v1899_v2 = vpack.c.bf16 %v728_v49, %v716_v58  ;;  %v2095_v38 = vpack.c.bf16 %v750_v45, %v738_v26  ;;  %v722_v29 = vand.u32 4294901760, %v721_v50  ;;  %v734_v51 = vand.u32 4294901760, %v733_v63  ;;  %v3539_v26 = vld [vmem:[#allocation65_spill] sm:$0xff] }
 0x2e3   :  { %1890 = vmatpush1.bf16.msra.mxu1 %v1889_v10  ;;  %2086 = vmatpush1.bf16.msra.mxu0 %v2085_v39  ;;  %v745_v13 = vsub.f32 %v2857_v48, %v744_v60  ;;  %v757_v23 = vsub.f32 %v2862_v52, %v756_v4  ;;  %v786_v62 = vand.u32 4294901760, %v2887_v12  ;;  %v798_v1 = vand.u32 4294901760, %v2892_v11  ;;  %v3537_v10 = vld [vmem:[#allocation63_spill] sm:$0xff] }
 0x2e4   :  { %1892 = vmatprep.subr.bf16.mxu1 %v1891_v41  ;;  %2088 = vmatprep.subr.bf16.mxu0 %v2087_v25  ;;  %v740_v37 = vand.u32 4294901760, %v739_v36  ;;  %v752_v32 = vand.u32 4294901760, %v751_v57  ;;  %v763_v34 = vsub.f32 %v2867_v15, %v762_v59  ;;  %v775_v58 = vsub.f32 %v2872_v16, %v774_v0  ;;  %v3538_v41 = vld [vmem:[#allocation64_spill] sm:$0xff] }
 0x2e5   :  { %v769_v49 = vsub.f32 %v2877_v19, %v768_v40  ;;  %v781_v47 = vsub.f32 %v2882_v20, %v780_v54  ;;  %v792_v30 = vand.u32 4294901760, %v3536_v24  ;;  %v804_v39 = vand.u32 4294901760, %v3537_v10 }
 0x2e6   :  { %v1901_v35 = vpack.c.bf16 %v734_v51, %v722_v29  ;;  %v2097_v3 = vpack.c.bf16 %v756_v4, %v744_v60  ;;  %v810_v25 = vand.u32 4294901760, %v3538_v41  ;;  %v822_v45 = vand.u32 4294901760, %v3539_v26 }
 0x2e7   :  { %1894 = vmatpush1.bf16.msra.mxu1 %v1893_v5  ;;  %2090 = vmatpush1.bf16.msra.mxu0 %v2089_v8  ;;  %v746_v5 = vand.u32 4294901760, %v745_v13  ;;  %v758_v8 = vand.u32 4294901760, %v757_v23  ;;  %v787_v50 = vsub.f32 %v2887_v12, %v786_v62  ;;  %v799_v63 = vsub.f32 %v2892_v11, %v798_v1 }
 0x2e8   :  { %1896 = vmatprep.subr.bf16.mxu1 %v1895_v55  ;;  %2092 = vmatprep.subr.bf16.mxu0 %v2091_v56  ;;  %v1903_v55 = vpack.c.bf16 %v752_v32, %v740_v37  ;;  %v2099_v56 = vpack.c.bf16 %v774_v0, %v762_v59  ;;  %v764_v36 = vand.u32 4294901760, %v763_v34  ;;  %v776_v57 = vand.u32 4294901760, %v775_v58 }
 0x2e9   :  { %v770_v29 = vand.u32 4294901760, %v769_v49  ;;  %v782_v60 = vand.u32 4294901760, %v781_v47  ;;  %v793_v4 = vsub.f32 %v3536_v24, %v792_v30  ;;  %v805_v51 = vsub.f32 %v3537_v10, %v804_v39 }
 0x2ea   :  { %v811_v13 = vsub.f32 %v3538_v41, %v810_v25  ;;  %v823_v23 = vsub.f32 %v3539_v26, %v822_v45  ;;  %v2101_v59 = vpack.c.bf16 %v780_v54, %v768_v40  ;;  %v788_v0 = vand.u32 4294901760, %v787_v50 }
 0x2eb   :  { %1898 = vmatpush1.bf16.msra.mxu1 %v1897_v14  ;;  %2094 = vmatpush1.bf16.msra.mxu0 %v2093_v6  ;;  %v816_v14 = vand.u32 4294901760, %v2915_v53  ;;  %v828_v6 = vand.u32 4294901760, %v2918_v7  ;;  %v1907_v37 = vpack.c.bf16 %v776_v57, %v764_v36  ;;  %v2103_v32 = vpack.c.bf16 %v798_v1, %v786_v62  ;;  %v3540_v1 = vld [vmem:[#allocation67_spill] sm:$0xff] }
 0x2ec   :  { %1900 = vmatprep.subr.bf16.mxu1 %v1899_v2  ;;  %2096 = vmatprep.subr.bf16.mxu0 %v2095_v38  ;;  %v1905_v2 = vpack.c.bf16 %v758_v8, %v746_v5  ;;  %v800_v38 = vand.u32 4294901760, %v799_v63  ;;  %v834_v34 = vand.u32 4294901760, %v2920_v17  ;;  %v846_v58 = vand.u32 4294901760, %v2922_v18  ;;  %v3541_v8 = vld [vmem:[#allocation68_spill] sm:$0xff]  ;;  %v3542_v63 = vld [vmem:[#allocation69_spill] sm:$0xff]  ;;  %v3543_v57 = vld [vmem:[#allocation71_spill] sm:$0xff] }
 0x2ed   :  { %v1909_v49 = vpack.c.bf16 %v782_v60, %v770_v29  ;;  %v2105_v47 = vpack.c.bf16 %v804_v39, %v792_v30  ;;  %v794_v10 = vand.u32 4294901760, %v793_v4  ;;  %v806_v41 = vand.u32 4294901760, %v805_v51  ;;  %v3544_v60 = vld [vmem:[#allocation72_spill] sm:$0xff] }
 0x2ee   :  { %v812_v24 = vand.u32 4294901760, %v811_v13  ;;  %v824_v26 = vand.u32 4294901760, %v823_v23  ;;  %v829_v40 = vsub.f32 %v2918_v7, %v828_v6  ;;  %v1911_v54 = vpack.c.bf16 %v800_v38, %v788_v0 }
 0x2ef   :  { %1902 = vmatpush1.bf16.msra.mxu1 %v1901_v35  ;;  %2098 = vmatpush1.bf16.msra.mxu0 %v2097_v3  ;;  %v817_v35 = vsub.f32 %v2915_v53, %v816_v14  ;;  %v2107_v3 = vpack.c.bf16 %v822_v45, %v810_v25  ;;  %v840_v62 = vand.u32 4294901760, %v2924_v22  ;;  %v852_v5 = vand.u32 4294901760, %v3540_v1 }
 0x2f0   :  { %1904 = vmatprep.subr.bf16.mxu1 %v1903_v55  ;;  %2100 = vmatprep.subr.bf16.mxu0 %v2099_v56  ;;  %v835_v30 = vsub.f32 %v2920_v17, %v834_v34  ;;  %v847_v39 = vsub.f32 %v2922_v18, %v846_v58  ;;  %v858_v50 = vand.u32 4294901760, %v3541_v8  ;;  %v870_v55 = vand.u32 4294901760, %v3542_v63 }
 0x2f1   :  { %v1913_v56 = vpack.c.bf16 %v806_v41, %v794_v10  ;;  %v2109_v36 = vpack.c.bf16 %v828_v6, %v816_v14  ;;  %v864_v29 = vand.u32 4294901760, %v3543_v57  ;;  %v876_v25 = vand.u32 4294901760, %v3544_v60 }
 0x2f2   :  { %v1915_v45 = vpack.c.bf16 %v824_v26, %v812_v24  ;;  %v2111_v4 = vpack.c.bf16 %v846_v58, %v834_v34  ;;  %v818_v51 = vand.u32 4294901760, %v817_v35  ;;  %v830_v13 = vand.u32 4294901760, %v829_v40  ;;  %v3547_v35 = vld [vmem:[#allocation81_spill] sm:$0xff] }
 0x2f3   :  { %1906 = vmatpush1.bf16.msra.mxu1 %v1905_v2  ;;  %2102 = vmatpush1.bf16.msra.mxu0 %v2101_v59  ;;  %v841_v23 = vsub.f32 %v2924_v22, %v840_v62  ;;  %v853_v2 = vsub.f32 %v3540_v1, %v852_v5  ;;  %v882_v59 = vand.u32 4294901760, %v2942_v42  ;;  %v894_v0 = vand.u32 4294901760, %v2944_v33 }
 0x2f4   :  { %1908 = vmatprep.subr.bf16.mxu1 %v1907_v37  ;;  %2104 = vmatprep.subr.bf16.mxu0 %v2103_v32  ;;  %v836_v10 = vand.u32 4294901760, %v835_v30  ;;  %v848_v41 = vand.u32 4294901760, %v847_v39  ;;  %v859_v14 = vsub.f32 %v3541_v8, %v858_v50  ;;  %v871_v24 = vsub.f32 %v3542_v63, %v870_v55  ;;  %v3545_v37 = vld [vmem:[#allocation78_spill] sm:$0xff] }
 0x2f5   :  { %v865_v26 = vsub.f32 %v3543_v57, %v864_v29  ;;  %v877_v6 = vsub.f32 %v3544_v60, %v876_v25  ;;  %v888_v38 = vand.u32 4294901760, %v2946_v44  ;;  %v900_v32 = vand.u32 4294901760, %v3545_v37 }
 0x2f6   :  { %v1917_v34 = vpack.c.bf16 %v830_v13, %v818_v51  ;;  %v2113_v58 = vpack.c.bf16 %v852_v5, %v840_v62  ;;  %v918_v40 = vand.u32 4294901760, %v3547_v35  ;;  %v883_v30 = vsub.f32 %v2942_v42, %v882_v59 }
 0x2f7   :  { %1910 = vmatpush1.bf16.msra.mxu1 %v1909_v49  ;;  %2106 = vmatpush1.bf16.msra.mxu0 %v2105_v47  ;;  %v3546_v49 = vld [vmem:[#allocation80_spill] sm:$0xff]  ;;  %v895_v39 = vsub.f32 %v2944_v33, %v894_v0  ;;  %v1919_v60 = vpack.c.bf16 %v848_v41, %v836_v10  ;;  %v2115_v57 = vpack.c.bf16 %v870_v55, %v858_v50  ;;  %v860_v63 = vand.u32 4294901760, %v859_v14  ;;  %v3550_v14 = vld [vmem:[#allocation85_spill] sm:$0xff] }
 0x2f8   :  { %1912 = vmatprep.subr.bf16.mxu1 %v1911_v54  ;;  %2108 = vmatprep.subr.bf16.mxu0 %v2107_v3  ;;  %v906_v47 = vand.u32 4294901760, %v3546_v49  ;;  %v842_v54 = vand.u32 4294901760, %v841_v23  ;;  %v854_v3 = vand.u32 4294901760, %v853_v2  ;;  %v872_v8 = vand.u32 4294901760, %v871_v24  ;;  %v3549_v23 = vld [vmem:[#allocation84_spill] sm:$0xff] }
 0x2f9   :  { %v866_v51 = vand.u32 4294901760, %v865_v26  ;;  %v878_v62 = vand.u32 4294901760, %v877_v6  ;;  %v889_v5 = vsub.f32 %v2946_v44, %v888_v38  ;;  %v901_v13 = vsub.f32 %v3545_v37, %v900_v32  ;;  %v3551_v26 = vld [vmem:[#allocation87_spill] sm:$0xff] }
 0x2fa   :  { %v924_v2 = vand.u32 4294901760, %v3549_v23  ;;  %v907_v42 = vsub.f32 %v3546_v49, %v906_v47  ;;  %v919_v33 = vsub.f32 %v3547_v35, %v918_v40  ;;  %v2117_v50 = vpack.c.bf16 %v876_v25, %v864_v29  ;;  %v3553_v25 = vld [vmem:[#allocation90_spill] sm:$0xff] }
 0x2fb   :  { %1914 = vmatpush1.bf16.msra.mxu1 %v1913_v56  ;;  %2110 = vmatpush1.bf16.msra.mxu0 %v2109_v36  ;;  %v3548_v56 = vld [vmem:[#allocation82_spill] sm:$0xff]  ;;  %v884_v55 = vand.u32 4294901760, %v883_v30  ;;  %v1923_v10 = vpack.c.bf16 %v872_v8, %v860_v63  ;;  %v2119_v41 = vpack.c.bf16 %v894_v0, %v882_v59  ;;  %v930_v24 = vand.u32 4294901760, %v3550_v14  ;;  %v3552_v8 = vld [vmem:[#allocation88_spill] sm:$0xff] }
 0x2fc   :  { %1916 = vmatprep.subr.bf16.mxu1 %v1915_v45  ;;  %2112 = vmatprep.subr.bf16.mxu0 %v2111_v4  ;;  %v912_v36 = vand.u32 4294901760, %v3548_v56  ;;  %v1921_v45 = vpack.c.bf16 %v854_v3, %v842_v54  ;;  %v896_v4 = vand.u32 4294901760, %v895_v39  ;;  %v942_v6 = vand.u32 4294901760, %v3551_v26 }
 0x2fd   :  { %v1925_v37 = vpack.c.bf16 %v878_v62, %v866_v51  ;;  %v2121_v44 = vpack.c.bf16 %v900_v32, %v888_v38  ;;  %v890_v1 = vand.u32 4294901760, %v889_v5  ;;  %v902_v49 = vand.u32 4294901760, %v901_v13  ;;  %v3555_v32 = vld [vmem:[#allocation92_spill] sm:$0xff]  ;;  %v3556_v5 = vld [vmem:[#allocation94_spill] sm:$0xff] }
 0x2fe   :  { %v908_v22 = vand.u32 4294901760, %v907_v42  ;;  %v920_v35 = vand.u32 4294901760, %v919_v33  ;;  %v925_v29 = vsub.f32 %v3549_v23, %v924_v2  ;;  %v936_v63 = vand.u32 4294901760, %v3552_v8  ;;  %v3554_v42 = vld [vmem:[#allocation91_spill] sm:$0xff] }
 0x2ff   :  { %1918 = vmatpush1.bf16.msra.mxu1 %v1917_v34  ;;  %2114 = vmatpush1.bf16.msra.mxu0 %v2113_v58  ;;  %v913_v34 = vsub.f32 %v3548_v56, %v912_v36  ;;  %v948_v59 = vand.u32 4294901760, %v3553_v25  ;;  %v931_v0 = vsub.f32 %v3550_v14, %v930_v24  ;;  %v943_v38 = vsub.f32 %v3551_v26, %v942_v6 }
 0x300   :  { %1920 = vmatprep.subr.bf16.mxu1 %v1919_v60  ;;  %2116 = vmatprep.subr.bf16.mxu0 %v2115_v57  ;;  %v1927_v60 = vpack.c.bf16 %v896_v4, %v884_v55  ;;  %v2123_v57 = vpack.c.bf16 %v918_v40, %v906_v47  ;;  %v954_v33 = vand.u32 4294901760, %v3554_v42  ;;  %v966_v58 = vand.u32 4294901760, %v3555_v32 }
 0x301   :  { %v1929_v54 = vpack.c.bf16 %v902_v49, %v890_v1  ;;  %v2125_v3 = vpack.c.bf16 %v924_v2, %v912_v36  ;;  %v1931_v30 = vpack.c.bf16 %v920_v35, %v908_v22  ;;  %v2127_v39 = vpack.c.bf16 %v942_v6, %v930_v24 }
 0x302   :  { %v914_v51 = vand.u32 4294901760, %v913_v34  ;;  %v926_v47 = vand.u32 4294901760, %v925_v29  ;;  %v937_v40 = vsub.f32 %v3552_v8, %v936_v63  ;;  %v949_v62 = vsub.f32 %v3553_v25, %v948_v59 }
 0x303   :  { %1922 = vmatpush1.bf16.msra.mxu1 %v1921_v45  ;;  %2118 = vmatpush1.bf16.msra.mxu0 %v2117_v50  ;;  %v960_v13 = vand.u32 4294901760, %v3556_v5  ;;  %v3557_v45 = vld [vmem:[#allocation95_spill] sm:$0xff]  ;;  %v932_v55 = vand.u32 4294901760, %v931_v0  ;;  %v944_v4 = vand.u32 4294901760, %v943_v38  ;;  %v955_v1 = vsub.f32 %v3554_v42, %v954_v33  ;;  %v3558_v0 = vld [vmem:[#allocation18_spill] sm:$0xff] }
 0x304   :  { %1924 = vmatprep.subr.bf16.mxu1 %v1923_v10  ;;  %2120 = vmatprep.subr.bf16.mxu0 %v2119_v41  ;;  %v972_v50 = vand.u32 4294901760, %v3557_v45  ;;  %v967_v22 = vsub.f32 %v3555_v32, %v966_v58  ;;  %v1933_v49 = vpack.c.bf16 %v926_v47, %v914_v51  ;;  %v2129_v35 = vpack.c.bf16 %v948_v59, %v936_v63  ;;  %v3559_v38 = vld [vmem:[#allocation19_spill] sm:$0xff]  ;;  %v3565_v47 = vld [vmem:[#allocation25_spill] sm:$0xff] }
 0x305   :  { %v961_v36 = vsub.f32 %v3556_v5, %v960_v13  ;;  %v1935_v10 = vpack.c.bf16 %v944_v4, %v932_v55  ;;  %v2131_v41 = vpack.c.bf16 %v966_v58, %v954_v33  ;;  %v956_v24 = vand.u32 4294901760, %v955_v1  ;;  %v3561_v58 = vld [vmem:[#allocation97_spill] sm:$0xff]  ;;  %v3570_v1 = vld [vmem:[#allocation27_spill] sm:$0xff] }
 0x306   :  { %v973_v2 = vsub.f32 %v3557_v45, %v972_v50  ;;  %v968_v6 = vand.u32 4294901760, %v967_v22  ;;  %v2133_v29 = vpack.c.bf16 %v972_v50, %v960_v13  ;;  %v3567_v13 = vld [vmem:[#allocation24_spill] sm:$0xff]  ;;  %v3569_v55 = vld [vmem:[#allocation29_spill] sm:$0xff]  ;;  %v3571_v22 = vld [vmem:[#allocation31_spill] sm:$0xff] }
 0x307   :  { %1926 = vmatpush1.bf16.msra.mxu1 %v1925_v37  ;;  %2122 = vmatpush1.bf16.msra.mxu0 %v2121_v44  ;;  %v938_v44 = vand.u32 4294901760, %v937_v40  ;;  %v950_v37 = vand.u32 4294901760, %v949_v62  ;;  %v3566_v40 = vld [vmem:[#allocation26_spill] sm:$0xff]  ;;  %v3568_v50 = vld [vmem:[#allocation28_spill] sm:$0xff] }
 0x308   :  { %1928 = vmatprep.subr.bf16.mxu1 %v1927_v60  ;;  %2124 = vmatprep.subr.bf16.mxu0 %v2123_v57  ;;  %v962_v60 = vand.u32 4294901760, %v961_v36  ;;  %v974_v57 = vand.u32 4294901760, %v973_v2  ;;  %v1939_v63 = vpack.c.bf16 %v968_v6, %v956_v24  ;;  %v1947_v62 = vpack.c.bf16 %v3566_v40, %v3565_v47  ;;  %v3575_v36 = vld [vmem:[#allocation35_spill] sm:$0xff]  ;;  %v3576_v2 = vld [vmem:[#allocation53_spill] sm:$0xff]  ;;  %v3580_v6 = vld [vmem:[#allocation56_spill] sm:$0xff] }
 0x309   :  { %v1937_v34 = vpack.c.bf16 %v950_v37, %v938_v44  ;;  %v1949_v4 = vpack.c.bf16 %v3569_v55, %v3568_v50  ;;  %v3574_v44 = vld [vmem:[#allocation34_spill] sm:$0xff]  ;;  %v3579_v24 = vld [vmem:[#allocation55_spill] sm:$0xff]  ;;  %v1969_v40 = vpack.c.bf16 %v2862_v52, %v2857_v48  ;;  %v3593_v50 = vld [vmem:[#allocation44_spill] sm:$0xff] }
 0x30a   :  { %v1941_v59 = vpack.c.bf16 %v974_v57, %v962_v60  ;;  %v1953_v37 = vpack.c.bf16 %v3574_v44, %v3534_v9  ;;  %v3582_v60 = vld [vmem:[#allocation57_spill] sm:$0xff]  ;;  %v3584_v9 = vld [vmem:[#allocation58_spill] sm:$0xff]  ;;  %v3597_v52 = vld [vmem:[#allocation63_spill] sm:$0xff] }
 0x30b   :  { %1930 = vmatpush1.bf16.msra.mxu1 %v1929_v54  ;;  %2126 = vmatpush1.bf16.msra.mxu0 %v2125_v3  ;;  %v3560_v54 = vld [vmem:[#allocation20_spill] sm:$0xff]  ;;  %v3562_v3 = vld [vmem:[#allocation22_spill] sm:$0xff]  ;;  %v1959_v57 = vpack.c.bf16 %v3582_v60, %v2805_v61  ;;  %v1967_v61 = vpack.c.bf16 %v2852_v46, %v2847_v31  ;;  %v1975_v31 = vpack.c.bf16 %v2892_v11, %v2887_v12  ;;  %v3606_v44 = vld [vmem:[#allocation51_spill] sm:$0xff] }
 0x30c   :  { %1932 = vmatprep.subr.bf16.mxu1 %v1931_v30  ;;  %2128 = vmatprep.subr.bf16.mxu0 %v2127_v39  ;;  %v1943_v33 = vpack.c.bf16 %v3560_v54, %v3559_v38  ;;  %v3563_v30 = vld [vmem:[#allocation21_spill] sm:$0xff]  ;;  %v3564_v39 = vld [vmem:[#allocation23_spill] sm:$0xff]  ;;  %v3587_v54 = vld [vmem:[#allocation60_spill] sm:$0xff]  ;;  %v1983_v12 = vpack.c.bf16 %v2922_v18, %v2920_v17 }
 0x30d   :  { %v1945_v51 = vpack.c.bf16 %v3564_v39, %v3563_v30  ;;  %v3586_v38 = vld [vmem:[#allocation39_spill] sm:$0xff]  ;;  %v3589_v30 = vld [vmem:[#allocation40_spill] sm:$0xff]  ;;  %v1965_v39 = vpack.c.bf16 %v2841_v28, %v2836_v27  ;;  %v3591_v47 = vld [vmem:[#allocation42_spill] sm:$0xff]  ;;  %v1973_v27 = vpack.c.bf16 %v2882_v20, %v2877_v19  ;;  %v1981_v19 = vpack.c.bf16 %v2918_v7, %v2915_v53 }
 0x30e   :  { %v3594_v28 = vld [vmem:[#allocation45_spill] sm:$0xff]  ;;  %v3595_v46 = vld [vmem:[#allocation46_spill] sm:$0xff]  ;;  %v3610_v53 = vld [vmem:[#allocation71_spill] sm:$0xff] }
 0x30f   :  { %1934 = vmatpush1.bf16.msra.mxu1 %v1933_v49  ;;  %2130 = vmatpush1.bf16.msra.mxu0 %v2129_v35  ;;  %v3572_v49 = vld [vmem:[#allocation32_spill] sm:$0xff]  ;;  %v3573_v35 = vld [vmem:[#allocation30_spill] sm:$0xff]  ;;  %v3602_v20 = vld [vmem:[#allocation49_spill] sm:$0xff] }
 0x310   :  { %1936 = vmatprep.subr.bf16.mxu1 %v1935_v10  ;;  %2132 = vmatprep.subr.bf16.mxu0 %v2131_v41  ;;  %v3578_v41 = vld [vmem:[#allocation36_spill] sm:$0xff]  ;;  %v3596_v48 = vld [vmem:[#allocation62_spill] sm:$0xff]  ;;  %v3614_v17 = vld [vmem:[#allocation75_spill] sm:$0xff] }
 0x311   :  { %v1977_v55 = vpack.c.bf16 %v3597_v52, %v3596_v48  ;;  %v3603_v11 = vld [vmem:[#allocation50_spill] sm:$0xff]  ;;  %v3611_v7 = vld [vmem:[#allocation72_spill] sm:$0xff] }
 0x312   :  { %v3613_v18 = vld [vmem:[#allocation74_spill] sm:$0xff] }
 0x313   :  { %1938 = vmatpush1.bf16.msra.mxu1 %v1937_v34  ;;  %2134 = vmatpush1.bf16.msra.mxu0 %v2133_v29  ;;  %v1957_v34 = vpack.c.bf16 %v3580_v6, %v3579_v24  ;;  %v3581_v29 = vld [vmem:[#allocation37_spill] sm:$0xff]  ;;  %v1991_v24 = vpack.c.bf16 %v3614_v17, %v3613_v18 }
 0x314   :  { %1940 = vmatprep.subr.bf16.mxu1 %v1939_v63  ;;  %2136 = vmatprep.subr.bf16.mxu0 %v3558_v0  ;;  %v3583_v63 = vld [vmem:[#allocation38_spill] sm:$0xff]  ;;  %v3615_v6 = vld [vmem:[#allocation73_spill] sm:$0xff] }
 0x316   :  { %1588 = vmatmul.mubr.f32.vlgmr.msra.gmra.mrb[0].mxu0 %v3561_v58 }
 0x317   :  { %1942 = vmatpush1.bf16.msra.mxu1 %v1941_v59  ;;  %2138 = vmatpush1.bf16.msra.mxu0 %v3562_v3  ;;  %v3585_v59 = vld [vmem:[#allocation59_spill] sm:$0xff] }
 0x318   :  { %1723 = vmatprep.mubr.f32.mxu0 %v3030_v43  ;;  %1944 = vmatprep.subr.bf16.mxu1 %v1943_v33  ;;  %v1951_v43 = vpack.c.bf16 %v3572_v49, %v3571_v22  ;;  %v1961_v0 = vpack.c.bf16 %v3585_v59, %v3584_v9  ;;  %v3588_v33 = vld [vmem:[#allocation61_spill] sm:$0xff]  ;;  %v3601_v22 = vld [vmem:[#allocation48_spill] sm:$0xff]  ;;  %v3604_v49 = vld [vmem:[#allocation66_spill] sm:$0xff] }
 0x319   :  { %2140 = vmatprep.subr.bf16.mxu0 %v3567_v13  ;;  %v1963_v3 = vpack.c.bf16 %v3588_v33, %v3587_v54  ;;  %v1971_v13 = vpack.c.bf16 %v2872_v16, %v2867_v15  ;;  %v3599_v15 = vld [vmem:[#allocation64_spill] sm:$0xff]  ;;  %v3600_v16 = vld [vmem:[#allocation65_spill] sm:$0xff]  ;;  %v3622_v54 = vld [vmem:[#allocation83_spill] sm:$0xff]  ;;  %v1999_v33 = vpack.c.bf16 %v3551_v26, %v3550_v14 }
 0x31a   :  { %979 = vmatmul.mubr.f32.vlgmr.msra.gmra.mrb[0].mxu1 %v3561_v58  ;;  %v3620_v9 = vld [vmem:[#allocation81_spill] sm:$0xff]  ;;  %v3627_v14 = vld [vmem:[#allocation98_spill] sm:$0xff] }
 0x31b   :  { %1946 = vmatpush1.bf16.msra.mxu1 %v1945_v51  ;;  %1179 = vmatprep.mubr.f32.mxu1 %v3038_v21  ;;  %v3577_v21 = vld [vmem:[#allocation54_spill] sm:$0xff]  ;;  %v3590_v51 = vld [vmem:[#allocation41_spill] sm:$0xff] }
 0x31c   :  { %2142 = vmatpush1.bf16.msra.mxu0 %v3570_v1  ;;  %1948 = vmatprep.subr.bf16.mxu1 %v1947_v62  ;;  %v1955_v10 = vpack.c.bf16 %v3577_v21, %v3576_v2  ;;  %v3592_v62 = vld [vmem:[#allocation43_spill] sm:$0xff]  ;;  %v1979_v1 = vpack.c.bf16 %v3600_v16, %v3599_v15  ;;  %v3609_v21 = vld [vmem:[#allocation52_spill] sm:$0xff] }
 0x31d   :  { %2144 = vmatprep.subr.bf16.mxu0 %v3573_v35  ;;  %v3630_v16 = vld [vmem:[#allocation15_spill] sm:$0xff] }
 0x31f   :  { %1950 = vmatpush1.bf16.msra.mxu1 %v1949_v4  ;;  %v3598_v4 = vld [vmem:[#allocation47_spill] sm:$0xff] }
 0x320   :  { %2146 = vmatpush1.bf16.msra.mxu0 %v3575_v36  ;;  %1952 = vmatprep.subr.bf16.mxu1 %v1951_v43  ;;  %v3605_v43 = vld [vmem:[#allocation67_spill] sm:$0xff]  ;;  %v3608_v36 = vld [vmem:[#allocation69_spill] sm:$0xff] }
 0x321   :  { %2148 = vmatprep.subr.bf16.mxu0 %v3578_v41  ;;  %v1985_v35 = vpack.c.bf16 %v3605_v43, %v3604_v49  ;;  %v3612_v41 = vld [vmem:[#allocation70_spill] sm:$0xff]  ;;  %v2244_v43 = vld [vmem:[#allocation5 + $0x8] sm:$0xff] }
 0x323   :  { %1954 = vmatpush1.bf16.msra.mxu1 %v1953_v37  ;;  %v3607_v37 = vld [vmem:[#allocation68_spill] sm:$0xff] }
 0x324   :  { %2150 = vmatpush1.bf16.msra.mxu0 %v3581_v29  ;;  %1956 = vmatprep.subr.bf16.mxu1 %v1955_v10  ;;  %v1987_v2 = vpack.c.bf16 %v3608_v36, %v3607_v37  ;;  %v1989_v10 = vpack.c.bf16 %v3611_v7, %v3610_v53  ;;  %v3617_v29 = vld [vmem:[#allocation78_spill] sm:$0xff] }
 0x325   :  { %2152 = vmatprep.subr.bf16.mxu0 %v3583_v63  ;;  %v3619_v63 = vld [vmem:[#allocation80_spill] sm:$0xff] }
 0x326   :  { %v1995_v59 = vpack.c.bf16 %v3620_v9, %v3619_v63 }
 0x327   :  { %1958 = vmatpush1.bf16.msra.mxu1 %v1957_v34  ;;  %v3616_v34 = vld [vmem:[#allocation76_spill] sm:$0xff] }
 0x328   :  { %2154 = vmatpush1.bf16.msra.mxu0 %v3586_v38  ;;  %1960 = vmatprep.subr.bf16.mxu1 %v1959_v57  ;;  %v1993_v60 = vpack.c.bf16 %v3617_v29, %v3616_v34  ;;  %v3618_v57 = vld [vmem:[#allocation77_spill] sm:$0xff]  ;;  %v1997_v38 = vpack.c.bf16 %v3549_v23, %v3548_v56  ;;  %v2005_v56 = vpack.c.bf16 %v3557_v45, %v3556_v5  ;;  %v3626_v23 = vld [vmem:[#allocation96_spill] sm:$0xff] }
 0x329   :  { %2156 = vmatprep.subr.bf16.mxu0 %v3589_v30  ;;  %v2001_v30 = vpack.c.bf16 %v3553_v25, %v3552_v8 }
 0x32b   :  { %1962 = vmatpush1.bf16.msra.mxu1 %v1961_v0  ;;  %v3621_v0 = vld [vmem:[#allocation79_spill] sm:$0xff] }
 0x32c   :  { %2158 = vmatpush1.bf16.msra.mxu0 %v3590_v51  ;;  %1964 = vmatprep.subr.bf16.mxu1 %v1963_v3  ;;  %v3623_v3 = vld [vmem:[#allocation86_spill] sm:$0xff]  ;;  %v2003_v51 = vpack.c.bf16 %v3555_v32, %v3554_v42 }
 0x32d   :  { %2160 = vmatprep.subr.bf16.mxu0 %v3591_v47 }
 0x32f   :  { %1966 = vmatpush1.bf16.msra.mxu1 %v1965_v39  ;;  %v3624_v39 = vld [vmem:[#allocation89_spill] sm:$0xff] }
 0x330   :  { %2162 = vmatpush1.bf16.msra.mxu0 %v3592_v62  ;;  %1968 = vmatprep.subr.bf16.mxu1 %v1967_v61  ;;  %v3625_v61 = vld [vmem:[#allocation93_spill] sm:$0xff] }
 0x331   :  { %2164 = vmatprep.subr.bf16.mxu0 %v3593_v50 }
 0x333   :  { %1970 = vmatpush1.bf16.msra.mxu1 %v1969_v40 }
 0x334   :  { %2166 = vmatpush1.bf16.msra.mxu0 %v3594_v28  ;;  %1972 = vmatprep.subr.bf16.mxu1 %v1971_v13 }
 0x335   :  { %2168 = vmatprep.subr.bf16.mxu0 %v3595_v46 }
 0x337   :  { %1974 = vmatpush1.bf16.msra.mxu1 %v1973_v27 }
 0x338   :  { %2170 = vmatpush1.bf16.msra.mxu0 %v3598_v4  ;;  %1976 = vmatprep.subr.bf16.mxu1 %v1975_v31  ;;  %v3628_v31 = vld [vmem:[#allocation16_spill] sm:$0xff]  ;;  %v3629_v4 = vld [vmem:[#allocation17_spill] sm:$0xff] }
 0x339   :  { %2172 = vmatprep.subr.bf16.mxu0 %v3601_v22 }
 0x33b   :  { %1978 = vmatpush1.bf16.msra.mxu1 %v1977_v55 }
 0x33c   :  { %2174 = vmatpush1.bf16.msra.mxu0 %v3602_v20  ;;  %1980 = vmatprep.subr.bf16.mxu1 %v1979_v1 }
 0x33d   :  { %2176 = vmatprep.subr.bf16.mxu0 %v3603_v11  ;;  %v2243_v11 = vld [vmem:[#allocation5] sm:$0xff] }
 0x33f   :  { %1982 = vmatpush1.bf16.msra.mxu1 %v1981_v19 }
 0x340   :  { %2178 = vmatpush1.bf16.msra.mxu0 %v3606_v44  ;;  %1984 = vmatprep.subr.bf16.mxu1 %v1983_v12 }
 0x341   :  { %2180 = vmatprep.subr.bf16.mxu0 %v3609_v21 }
 0x343   :  { %1986 = vmatpush1.bf16.msra.mxu1 %v1985_v35 }
 0x344   :  { %2182 = vmatpush1.bf16.msra.mxu0 %v3612_v41  ;;  %1988 = vmatprep.subr.bf16.mxu1 %v1987_v2 }
 0x345   :  { %2184 = vmatprep.subr.bf16.mxu0 %v3615_v6 }
 0x347   :  { %1990 = vmatpush1.bf16.msra.mxu1 %v1989_v10 }
 0x348   :  { %2186 = vmatpush1.bf16.msra.mxu0 %v3618_v57  ;;  %1992 = vmatprep.subr.bf16.mxu1 %v1991_v24 }
 0x349   :  { %2188 = vmatprep.subr.bf16.mxu0 %v3621_v0 }
 0x34b   :  { %1994 = vmatpush1.bf16.msra.mxu1 %v1993_v60 }
 0x34c   :  { %2190 = vmatpush1.bf16.msra.mxu0 %v3622_v54  ;;  %1996 = vmatprep.subr.bf16.mxu1 %v1995_v59 }
 0x34d   :  { %2192 = vmatprep.subr.bf16.mxu0 %v3623_v3 }
 0x34f   :  { %1998 = vmatpush1.bf16.msra.mxu1 %v1997_v38 }
 0x350   :  { %2194 = vmatpush1.bf16.msra.mxu0 %v3624_v39  ;;  %2000 = vmatprep.subr.bf16.mxu1 %v1999_v33 }
 0x351   :  { %2196 = vmatprep.subr.bf16.mxu0 %v3625_v61 }
 0x353   :  { %2002 = vmatpush1.bf16.msra.mxu1 %v2001_v30 }
 0x354   :  { %2198 = vmatpush1.bf16.msra.mxu0 %v3626_v23  ;;  %2004 = vmatprep.subr.bf16.mxu1 %v2003_v51 }
 0x357   :  { %1725 = vmatmul.mubr.f32.vlgmr.msra.gmra.mrb[0].mxu0 %v3561_v58  ;;  %2006 = vmatpush1.bf16.msra.mxu1 %v2005_v56 }
 0x35a   :  { %1182 = vmatmul.mubr.f32.vlgmr.msra.gmra.mrb[0].mxu1 %v3627_v14 }
 0x42a   :  { %v1726_v26 = vpop.f32.mrb[0].mxu0 }
 0x42b   :  { %v1728_v8 = vpop.f32.mrb[1].mxu0 }
 0x42d   :  { %v1183_v25 = vpop.f32.mrb[0].mxu1 }
 0x42e   :  { %v2199_v47 = vadd.f32 %v1726_v26, %v1183_v25  ;;  %v1185_v40 = vpop.f32.mrb[1].mxu1 }
 0x42f   :  { %v2200_v42 = vadd.f32 %v1728_v8, %v1185_v40 }
 0x430   :  { %v1813_v32 = vmul.f32 -1.442695, %v2199_v47 }
 0x431   :  { %v1814_v62 = vmul.f32 -1.442695, %v2200_v42 }
 0x432   :  { %2235 = vpow2.f32 %v1813_v32 }
 0x433   :  { %2237 = vpow2.f32 %v1814_v62 }
 0x43c   :  { %v2236_v13 = vpop.eup %2235 }
 0x43d   :  { %v2238_v5 = vpop.eup %2237  ;;  %v1737_v45 = vadd.f32 1.0, %v2236_v13 }
 0x43e   :  { %v1738_v50 = vadd.f32 1.0, %v2238_v5 }
 0x43f   :  { %2239 = vrcp.f32 %v1737_v45 }
 0x440   :  { %2241 = vrcp.f32 %v1738_v50 }
 0x449   :  { %v2240_v58 = vpop.eup %2239 }
 0x44a   :  { %v2242_v27 = vpop.eup %2241 }
 0x44b   :  { %v1745_v28 = vcombine.low %v2240_v58, %v2242_v27 }
 0x44d   :  { %v1752_v46 = vrot.slane %v1745_v28, %v3628_v31 }
 0x44f   :  { %v1753_v48 = vcombine.high %v1752_v46, %v1752_v46  ;;  %v1760_v52 = vrot.slane %v1752_v46, %v3628_v31 }
 0x451   :  { %v1767_v55 = vrot.slane %v1753_v48, %v3628_v31  ;;  %v1771_v15 = vrot.slane %v1760_v52, %v3629_v4  ;;  %v1775_v1 = vrot.slane %v1760_v52, %v3630_v16 }
 0x453   :  { %v1779_v22 = vrot.slane %v1767_v55, %v3629_v4  ;;  %v1783_v19 = vrot.slane %v1767_v55, %v3630_v16  ;;  %v1784_v20 = vcombine.low %v1771_v15, %v1775_v1 }
 0x455   :  { %v1785_v12 = vcombine.low %v1779_v22, %v1783_v19  ;;  %v1788_v49 = vmul.f32 %v2243_v11, %v1784_v20 }
 0x457   :  { %v1789_v35 = vmul.f32 %v2244_v43, %v1785_v12  ;;  %1790 = vst [vmem:[#allocation10] sm:$0xff] %v1788_v49 }
 0x459   :  { %1791 = vst [vmem:[#allocation10 + $0x8] sm:$0xff] %v1789_v35 }
 0x45a   :  { %2344 = shalt.err (!%p2341_p8)
}
 0x45b   :  { %s2345_s24 = scalar_lea.hbm %s3286_s5, 256 }
 0x45c   :  { %p2346_p9 = scmp.ne.s32.totalorder %s3286_s5, %s2345_s24  ;;  %p2349_p10 = scmp.lt.u32.totalorder %s2345_s24, %s3286_s5 }
 0x45e   :  { %p2351_p11 = pnand %p2349_p10, %p2346_p9 }
 0x460   :  { %2354 = shalt.err (!%p2351_p11)
}
 0x461   :  { %1803 = dma.vmem_to_hbm [thread:$0]  %s1798_s19, 256, %s3286_s5, [#allocation4], %s2365_s30, %s2365_s30, %s2366_s6  }
 0x462   :  { %2361 = dma.done.wait [#allocation4], 256  }
 0x463   :  { %2362 = vsyncadd [#allocation4], 4294967040 }
 0x464   :  { %1807 = vsyncpa [#allocation3], 1 }
 0x465   :  { %1808 = vsyncpa [#allocation6], 1 }
 0x466   :  { %1809 = vsyncpa [#allocation9], 1 }
 0x467   :  { %1810 = vsyncpa [#allocation4], 1 }

</bundles_post_ra>
